<compile_context>
chip_gen: v7x
topology: tpu7x:2x2x1
jax: 0.10.0
libtpu: 0.0.40
codegen_flags: <defaults>
</compile_context>

<pallas_src>
import functools

import jax
import jax.numpy as jnp
from jax import lax
from jax.experimental import pallas as pl
from jax.experimental.pallas import tpu as pltpu


def _mv2_kernel(*refs, expand, nb, H, W, Chid, use_res, matmul_dtype,
                approx_sigmoid):
    """refs = (x, [w1, t1], wdw, t2, w3, t3, out).

    Block layouts (all lane-dense):
      x    : (nb, Cin,  H*W)      out : (nb, Cout, H*W)
      w1   : (Chid, Cin)          w3  : (Cout, Chid)        wdw : (Chid, 9)
      t*   : (C, 1) folded-BN shifts (scales already folded into the weights).
    """
    x_ref = refs[0]
    if expand:
        w1_ref, t1_ref = refs[1:3]
        wdw_ref, t2_ref, w3_ref, t3_ref = refs[3:7]
        o_ref = refs[7]
    else:
        wdw_ref, t2_ref, w3_ref, t3_ref = refs[1:5]
        o_ref = refs[5]

    HW = H * W

    def silu(v):
        # x * sigmoid(x).  approx reciprocal runs on the EUP slot (has slack).
        if approx_sigmoid:
            return v * pl.reciprocal(1.0 + jnp.exp(-v), approx=True)
        return v * (1.0 / (1.0 + jnp.exp(-v)))

    # ---- block-invariant values, hoisted out of the image loop -------------
    col = lax.broadcasted_iota(jnp.int32, (1, HW), 1) % W
    not_first_col = col > 0                        # valid mask for dx = -1 taps
    not_last_col = col < (W - 1)                   # valid mask for dx = +1 taps
    z1 = jnp.zeros((Chid, 1), jnp.float32)
    zW = jnp.zeros((Chid, W), jnp.float32)

    wdw = wdw_ref[...]                             # (Chid, 9), BN-scale folded
    wtaps = [wdw[:, k:k + 1] for k in range(9)]    # 9 x (Chid, 1)
    t2 = t2_ref[...]
    w3 = w3_ref[...].astype(matmul_dtype)          # (Cout, Chid)
    t3 = t3_ref[...]
    if expand:
        w1 = w1_ref[...].astype(matmul_dtype)      # (Chid, Cin)
        t1 = t1_ref[...]

    def process(n):
        x_n = x_ref[n]                             # (Cin, HW), lane-dense

        # ---- 1x1 expand conv (MXU) + folded BN + SiLU ----------------------
        if expand:
            h = jnp.dot(w1, x_n.astype(matmul_dtype),
                        preferred_element_type=jnp.float32)       # (Chid, HW)
            h = silu(h + t1)
        else:
            h = x_n.astype(jnp.float32)

        # ---- 3x3 depthwise conv (stride 1, pad 1), dx-hoisted taps ---------
        # Column masks handle the left/right borders once; row padding (zW)
        # handles the top/bottom borders; the 9 taps are then pure slices.
        hL = jnp.where(not_first_col,
                       jnp.concatenate([z1, h[:, :HW - 1]], axis=1), 0.0)
        hR = jnp.where(not_last_col,
                       jnp.concatenate([h[:, 1:], z1], axis=1), 0.0)
        pads = (jnp.concatenate([zW, hL, zW], axis=1),            # dx = -1
                jnp.concatenate([zW, h, zW], axis=1),             # dx =  0
                jnp.concatenate([zW, hR, zW], axis=1))            # dx = +1
        acc = jnp.zeros((Chid, HW), jnp.float32)
        for k in range(9):
            dy, dx = k // 3 - 1, k % 3 - 1
            src = pads[dx + 1]
            off = W + dy * W
            acc = acc + src[:, off:off + HW] * wtaps[k]
        h2 = silu(acc + t2)

        # ---- 1x1 project conv (MXU) + folded BN (+ residual) ---------------
        y = jnp.dot(w3, h2.astype(matmul_dtype),
                    preferred_element_type=jnp.float32)           # (Cout, HW)
        y = y + t3
        if use_res:                                # stride==1 and inp==oup
            y = y + x_n.astype(jnp.float32)
        o_ref[n] = y.astype(o_ref.dtype)

    if nb == 1:
        process(0)
    else:
        # fori_loop (not a Python unroll) bounds live ranges to one image.
        def body(n, carry):
            process(n)
            return carry
        lax.fori_loop(0, nb, body, 0)


def _fold_bn(gamma, beta, mean, var, eps=1e-5):
    scale = gamma / jnp.sqrt(var + eps)
    shift = beta - mean * scale
    return scale.reshape(-1, 1), shift.reshape(-1, 1)


def init_params(key, inp, oup, expansion=4):
    """Deterministic synthetic params; shapes follow the PyTorch module."""
    hidden = int(inp * expansion)
    ks = list(jax.random.split(key, 16))
    p = {}
    if expansion != 1:
        # Conv2d(inp, hidden, 1).weight (hidden, inp, 1, 1) -> (hidden, inp)
        p["w1"] = jax.random.normal(ks[0], (hidden, inp), jnp.float32) / (inp ** 0.5)
        p["s1"], p["t1"] = _fold_bn(
            1.0 + 0.1 * jax.random.normal(ks[1], (hidden,), jnp.float32),
            0.1 * jax.random.normal(ks[2], (hidden,), jnp.float32),
            0.1 * jax.random.normal(ks[3], (hidden,), jnp.float32),
            1.0 + 0.1 * jax.random.uniform(ks[4], (hidden,), jnp.float32))
    # depthwise Conv2d(hidden, hidden, 3, groups=hidden).weight (hidden,1,3,3)
    # -> stored as (hidden, 9) with k = ky*3 + kx
    p["wdw"] = jax.random.normal(ks[5], (hidden, 9), jnp.float32) / 3.0
    p["s2"], p["t2"] = _fold_bn(
        1.0 + 0.1 * jax.random.normal(ks[6], (hidden,), jnp.float32),
        0.1 * jax.random.normal(ks[7], (hidden,), jnp.float32),
        0.1 * jax.random.normal(ks[8], (hidden,), jnp.float32),
        1.0 + 0.1 * jax.random.uniform(ks[9], (hidden,), jnp.float32))
    # Conv2d(hidden, oup, 1).weight (oup, hidden, 1, 1) -> (oup, hidden)
    p["w3"] = jax.random.normal(ks[10], (oup, hidden), jnp.float32) / (hidden ** 0.5)
    p["s3"], p["t3"] = _fold_bn(
        1.0 + 0.1 * jax.random.normal(ks[11], (oup,), jnp.float32),
        0.1 * jax.random.normal(ks[12], (oup,), jnp.float32),
        0.1 * jax.random.normal(ks[13], (oup,), jnp.float32),
        1.0 + 0.1 * jax.random.uniform(ks[14], (oup,), jnp.float32))
    return p


def _vmem_capacity_bytes():
    try:
        info = pltpu.get_tpu_info()
        return int(getattr(info, "vmem_capacity_bytes", 64 << 20))
    except Exception:
        return 64 << 20          # conservative fallback (v7x-sized)


def mv2_block(x_nchw, params, *, inp, oup, stride=1, expansion=4,
              block_n=None, matmul_dtype=jnp.float32, out_dtype=None,
              approx_sigmoid=True):
    """MV2Block forward (eval-mode BN). Accepts / returns NCHW like PyTorch.

    Pass bf16 activations / out_dtype=jnp.bfloat16 to halve DMA bytes; set
    matmul_dtype=jnp.bfloat16 to halve MXU operand pushes (accumulation f32).
    """
    assert stride in (1, 2)
    N, Cin, H, W = x_nchw.shape
    assert Cin == inp
    hidden = int(inp * expansion)
    expand = expansion != 1
    use_res = (stride == 1 and inp == oup)
    HW = H * W
    if out_dtype is None:
        out_dtype = x_nchw.dtype

    # ---- VMEM-budget-aware block sizing (v7x: 64 MiB, v5e/v6e: 128 MiB) ----
    vmem_cap = _vmem_capacity_bytes()
    in_bytes = jnp.dtype(x_nchw.dtype).itemsize
    out_bytes = jnp.dtype(out_dtype).itemsize
    inter_bytes = 10 * hidden * HW * 4                  # one image live (fori_loop)
    per_img_io = 2 * HW * (Cin * in_bytes + oup * out_bytes)  # double-buffered
    if block_n is None:
        budget = int(vmem_cap * 0.5)
        io_budget = max(budget - inter_bytes, per_img_io)
        block_n = max(1, min(N, io_budget // per_img_io, 8))
        if N >= 2:
            block_n = min(block_n, N // 2)   # >=2 grid steps: keep both v7x TCs busy
    block_n = int(block_n)
    while N % block_n:                       # pick a divisor of N
        block_n -= 1
    vmem_limit = min(int(vmem_cap * 0.75), 96 << 20)

    # ---- fold BN scales into the conv weights (kernel keeps only shifts) ---
    if expand:
        w1 = (params["w1"] * params["s1"]).astype(jnp.float32)
        t1 = params["t1"]
    wdw = (params["wdw"] * params["s2"]).astype(jnp.float32)
    t2 = params["t2"]
    w3 = (params["w3"] * params["s3"]).astype(jnp.float32)
    t3 = params["t3"]

    # Lane-dense layout: (N, C, H*W) is a pure reshape of the NCHW buffer,
    # DMA'd in its native dtype (no forced f32 upcast at the HBM boundary).
    # TODO(synk): for late stages with H*W < 128, repack several images into
    # the lane dim ((C, nb*HW)) to avoid masked partial stores.
    x = x_nchw.reshape(N, Cin, HW)

    def wspec(shape):
        return pl.BlockSpec(shape, lambda g: (0, 0))

    args = [x]
    in_specs = [pl.BlockSpec((block_n, Cin, HW), lambda g: (g, 0, 0))]
    if expand:
        args += [w1, t1]
        in_specs += [wspec((hidden, inp)), wspec((hidden, 1))]
    args += [wdw, t2, w3, t3]
    in_specs += [wspec((hidden, 9)), wspec((hidden, 1)),
                 wspec((oup, hidden)), wspec((oup, 1))]

    kernel = functools.partial(
        _mv2_kernel, expand=expand, nb=block_n, H=H, W=W, Chid=hidden,
        use_res=use_res, matmul_dtype=matmul_dtype,
        approx_sigmoid=approx_sigmoid)

    out = pl.pallas_call(
        kernel,
        out_shape=jax.ShapeDtypeStruct((N, oup, HW), out_dtype),
        grid=(N // block_n,),
        in_specs=in_specs,
        out_specs=pl.BlockSpec((block_n, oup, HW), lambda g: (g, 0, 0)),
        compiler_params=pltpu.CompilerParams(
            dimension_semantics=("parallel",),   # batch axis: no accumulator
            vmem_limit_bytes=vmem_limit),
    )(*args)

    out = out.reshape(N, oup, H, W)
    if stride == 2:
        # Subsampling the 1x1-projected stride-1 output is numerically identical
        # to a stride-2 depthwise conv with padding=1.
        # TODO(synk): compute only even rows/cols inside the kernel (strided
        # taps) to save ~4x depthwise/project work on the downsampling blocks.
        out = out[:, :, ::2, ::2]
    return out


def mv2_reference(x_nchw, p, *, stride, expansion, use_res):
    """Pure-JAX NCHW reference with the same folded-BN inference semantics."""
    N, Cin, H, W = x_nchw.shape
    x = x_nchw.astype(jnp.float32)

    def silu(v):
        return v * (1.0 / (1.0 + jnp.exp(-v)))

    if expansion != 1:
        h = jnp.einsum('oc,nchw->nohw', p["w1"], x)
        h = silu(h * p["s1"].reshape(1, -1, 1, 1) + p["t1"].reshape(1, -1, 1, 1))
    else:
        h = x
    C = h.shape[1]
    hp = jnp.pad(h, ((0, 0), (0, 0), (1, 1), (1, 1)))
    Hout = (H + 2 - 3) // stride + 1
    Wout = (W + 2 - 3) // stride + 1
    wdw = p["wdw"].reshape(C, 3, 3)
    acc = jnp.zeros((N, C, Hout, Wout), jnp.float32)
    for ky in range(3):
        for kx in range(3):
            tap = hp[:, :, ky:ky + stride * (Hout - 1) + 1:stride,
                         kx:kx + stride * (Wout - 1) + 1:stride]
            acc = acc + tap * wdw[:, ky, kx].reshape(1, C, 1, 1)
    h2 = silu(acc * p["s2"].reshape(1, -1, 1, 1) + p["t2"].reshape(1, -1, 1, 1))
    y = jnp.einsum('oc,nchw->nohw', p["w3"], h2)
    y = y * p["s3"].reshape(1, -1, 1, 1) + p["t3"].reshape(1, -1, 1, 1)
    if use_res:
        y = y + x
    return y


if __name__ == "__main__":
    key = jax.random.PRNGKey(0)
    N, H, W = 4, 16, 16          # N=4 -> block_n=2 -> exercises the fori_loop path

    configs = [
        dict(inp=8, oup=8, stride=1, expansion=4),    # residual path
        dict(inp=8, oup=16, stride=2, expansion=4),   # downsampling path
        dict(inp=8, oup=8, stride=1, expansion=1),    # no-expand path
    ]

    for i, cfg in enumerate(configs):
        k_x, k_p = jax.random.split(jax.random.fold_in(key, i))
        x = jax.random.normal(k_x, (N, cfg["inp"], H, W), jnp.float32)  # NCHW
        params = init_params(k_p, cfg["inp"], cfg["oup"], cfg["expansion"])

        out = mv2_block(x, params, **cfg)
        out = jax.block_until_ready(out)

        use_res = cfg["stride"] == 1 and cfg["inp"] == cfg["oup"]
        ref = mv2_reference(x, params, stride=cfg["stride"],
                            expansion=cfg["expansion"], use_res=use_res)

        Hout = (H + 2 - 3) // cfg["stride"] + 1
        Wout = (W + 2 - 3) // cfg["stride"] + 1
        assert out.shape == (N, cfg["oup"], Hout, Wout), (i, out.shape)
        err = float(jnp.max(jnp.abs(out - ref)))
        # Tolerance covers the EUP approx-reciprocal sigmoid; structural bugs
        # would produce O(0.1-1) errors.
        assert jnp.allclose(out, ref, rtol=1e-2, atol=1e-2), (i, err)

    print("KERNEL_OK")
</pallas_src>

<mosaic_0001>
module attributes {stable_mosaic.version = 11 : i64} {
  func.func @_mv2_kernel(%arg0: i32, %arg1: memref<2x8x256xf32, #tpu.memory_space<vmem>>, %arg2: memref<32x8xf32, #tpu.memory_space<vmem>>, %arg3: memref<32x1xf32, #tpu.memory_space<vmem>>, %arg4: memref<32x9xf32, #tpu.memory_space<vmem>>, %arg5: memref<32x1xf32, #tpu.memory_space<vmem>>, %arg6: memref<8x32xf32, #tpu.memory_space<vmem>>, %arg7: memref<8x1xf32, #tpu.memory_space<vmem>>, %arg8: memref<2x8x256xf32, #tpu.memory_space<vmem>>) attributes {dimension_semantics = [#tpu.dimension_semantics<parallel>], iteration_bounds = array<i64: 2>, scalar_prefetch = 0 : i64, scratch_operands = 0 : i64, tpu.core_type = #tpu.core_type<tc>, window_params = [{transform_indices = @transform_0, window_bounds = array<i64: 2, 8, 256>}, {pipeline_mode = #tpu.pipeline_mode<synchronous>, transform_indices = @transform_1, window_bounds = array<i64: 32, 8>}, {pipeline_mode = #tpu.pipeline_mode<synchronous>, transform_indices = @transform_2, window_bounds = array<i64: 32, 1>}, {pipeline_mode = #tpu.pipeline_mode<synchronous>, transform_indices = @transform_3, window_bounds = array<i64: 32, 9>}, {pipeline_mode = #tpu.pipeline_mode<synchronous>, transform_indices = @transform_4, window_bounds = array<i64: 32, 1>}, {pipeline_mode = #tpu.pipeline_mode<synchronous>, transform_indices = @transform_5, window_bounds = array<i64: 8, 32>}, {pipeline_mode = #tpu.pipeline_mode<synchronous>, transform_indices = @transform_6, window_bounds = array<i64: 8, 1>}, {transform_indices = @transform_7, window_bounds = array<i64: 2, 8, 256>}]} {
    %0 = tpu.iota {dimensions = array<i32: 1>} : vector<1x256xi32>
    %c16_i32 = arith.constant 16 : i32
    %c0_i32 = arith.constant 0 : i32
    %1 = arith.cmpi eq, %c16_i32, %c0_i32 : i32
    %c1_i32 = arith.constant 1 : i32
    %2 = arith.select %1, %c1_i32, %c16_i32 : i32
    %3 = vector.broadcast %2 : i32 to vector<1x256xi32>
    %4 = arith.remsi %0, %3 : vector<1x256xi32>
    %c0_i32_0 = arith.constant 0 : i32
    %5 = vector.broadcast %c0_i32_0 : i32 to vector<1x256xi32>
    %6 = arith.cmpi ne, %4, %5 : vector<1x256xi32>
    %c0_i32_1 = arith.constant 0 : i32
    %7 = vector.broadcast %c0_i32_1 : i32 to vector<1x256xi32>
    %8 = arith.cmpi slt, %4, %7 : vector<1x256xi32>
    %c0_i32_2 = arith.constant 0 : i32
    %9 = arith.cmpi slt, %2, %c0_i32_2 : i32
    %10 = vector.broadcast %9 : i1 to vector<1x256xi1>
    %11 = vector.broadcast %10 : vector<1x256xi1> to vector<1x256xi1>
    %12 = arith.xori %8, %11 : vector<1x256xi1>
    %13 = arith.andi %12, %6 : vector<1x256xi1>
    %14 = vector.broadcast %2 : i32 to vector<1x256xi32>
    %15 = arith.addi %4, %14 : vector<1x256xi32>
    %16 = arith.select %13, %15, %4 : vector<1x256xi1>, vector<1x256xi32>
    %c0_i32_3 = arith.constant 0 : i32
    %17 = vector.broadcast %c0_i32_3 : i32 to vector<1x256xi32>
    %18 = arith.cmpi sgt, %16, %17 : vector<1x256xi32>
    %c15_i32 = arith.constant 15 : i32
    %19 = vector.broadcast %c15_i32 : i32 to vector<1x256xi32>
    %20 = arith.cmpi slt, %16, %19 : vector<1x256xi32>
    %cst = arith.constant 0.000000e+00 : f32
    %21 = vector.broadcast %cst : f32 to vector<32x1xf32>
    %cst_4 = arith.constant 0.000000e+00 : f32
    %22 = vector.broadcast %cst_4 : f32 to vector<32x16xf32>
    %c0 = arith.constant 0 : index
    %c0_5 = arith.constant 0 : index
    %23 = vector.load %arg4[%c0, %c0_5] : memref<32x9xf32, #tpu.memory_space<vmem>>, vector<32x9xf32>
    %24 = vector.extract_strided_slice %23 {offsets = [0, 0], sizes = [32, 1], strides = [1, 1]} : vector<32x9xf32> to vector<32x1xf32>
    %25 = vector.extract_strided_slice %23 {offsets = [0, 1], sizes = [32, 1], strides = [1, 1]} : vector<32x9xf32> to vector<32x1xf32>
    %26 = vector.extract_strided_slice %23 {offsets = [0, 2], sizes = [32, 1], strides = [1, 1]} : vector<32x9xf32> to vector<32x1xf32>
    %27 = vector.extract_strided_slice %23 {offsets = [0, 3], sizes = [32, 1], strides = [1, 1]} : vector<32x9xf32> to vector<32x1xf32>
    %28 = vector.extract_strided_slice %23 {offsets = [0, 4], sizes = [32, 1], strides = [1, 1]} : vector<32x9xf32> to vector<32x1xf32>
    %29 = vector.extract_strided_slice %23 {offsets = [0, 5], sizes = [32, 1], strides = [1, 1]} : vector<32x9xf32> to vector<32x1xf32>
    %30 = vector.extract_strided_slice %23 {offsets = [0, 6], sizes = [32, 1], strides = [1, 1]} : vector<32x9xf32> to vector<32x1xf32>
    %31 = vector.extract_strided_slice %23 {offsets = [0, 7], sizes = [32, 1], strides = [1, 1]} : vector<32x9xf32> to vector<32x1xf32>
    %32 = vector.extract_strided_slice %23 {offsets = [0, 8], sizes = [32, 1], strides = [1, 1]} : vector<32x9xf32> to vector<32x1xf32>
    %c0_6 = arith.constant 0 : index
    %c0_7 = arith.constant 0 : index
    %33 = vector.load %arg5[%c0_6, %c0_7] : memref<32x1xf32, #tpu.memory_space<vmem>>, vector<32x1xf32>
    %c0_8 = arith.constant 0 : index
    %c0_9 = arith.constant 0 : index
    %34 = vector.load %arg6[%c0_8, %c0_9] : memref<8x32xf32, #tpu.memory_space<vmem>>, vector<8x32xf32>
    %c0_10 = arith.constant 0 : index
    %c0_11 = arith.constant 0 : index
    %35 = vector.load %arg7[%c0_10, %c0_11] : memref<8x1xf32, #tpu.memory_space<vmem>>, vector<8x1xf32>
    %c0_12 = arith.constant 0 : index
    %c0_13 = arith.constant 0 : index
    %36 = vector.load %arg2[%c0_12, %c0_13] : memref<32x8xf32, #tpu.memory_space<vmem>>, vector<32x8xf32>
    %c0_14 = arith.constant 0 : index
    %c0_15 = arith.constant 0 : index
    %37 = vector.load %arg3[%c0_14, %c0_15] : memref<32x1xf32, #tpu.memory_space<vmem>>, vector<32x1xf32>
    %c0_i32_16 = arith.constant 0 : i32
    %c2_i32 = arith.constant 2 : i32
    %38 = arith.addi %c0_i32_16, %c2_i32 : i32
    %c1_i32_17 = arith.constant 1 : i32
    scf.for %arg9 = %c0_i32_16 to %38 step %c1_i32_17  : i32 {
      %39 = arith.index_cast %arg9 : i32 to index
      %c0_19 = arith.constant 0 : index
      %c0_20 = arith.constant 0 : index
      %40 = vector.load %arg1[%39, %c0_19, %c0_20] : memref<2x8x256xf32, #tpu.memory_space<vmem>>, vector<1x8x256xf32>
      %41 = vector.shape_cast %40 : vector<1x8x256xf32> to vector<8x256xf32>
      %cst_21 = arith.constant dense<0.000000e+00> : vector<32x256xf32>
      %42 = tpu.matmul %36, %41, %cst_21 {dimension_numbers = #tpu.dot_dimension_numbers<[1], [0], [0], [1], [0, 0, 1, 1], [], []>} : vector<32x8xf32>, vector<8x256xf32>, vector<32x256xf32> -> vector<32x256xf32>
      %43 = vector.broadcast %37 : vector<32x1xf32> to vector<32x256xf32>
      %44 = arith.addf %42, %43 : vector<32x256xf32>
      %cst_22 = arith.constant 0.000000e+00 : f32
      %45 = vector.broadcast %cst_22 : f32 to vector<32x256xf32>
      %46 = arith.subf %45, %44 : vector<32x256xf32>
      %47 = math.exp %46 : vector<32x256xf32>
      %cst_23 = arith.constant 1.000000e+00 : f32
      %48 = vector.broadcast %cst_23 : f32 to vector<32x256xf32>
      %49 = arith.addf %48, %47 : vector<32x256xf32>
      %50 = tpu.reciprocal %49 {approx = true} : vector<32x256xf32> -> vector<32x256xf32>
      %51 = arith.mulf %44, %50 : vector<32x256xf32>
      %52 = vector.extract_strided_slice %51 {offsets = [0, 0], sizes = [32, 255], strides = [1, 1]} : vector<32x256xf32> to vector<32x255xf32>
      %53 = tpu.concatenate %21, %52 in 1 : vector<32x1xf32>, vector<32x255xf32> -> vector<32x256xf32>
      %cst_24 = arith.constant 0.000000e+00 : f32
      %54 = vector.shape_cast %18 : vector<1x256xi1> to vector<1x256xi1>
      %55 = vector.broadcast %54 : vector<1x256xi1> to vector<32x256xi1>
      %56 = vector.broadcast %cst_24 : f32 to vector<32x256xf32>
      %57 = arith.select %55, %53, %56 : vector<32x256xi1>, vector<32x256xf32>
      %58 = vector.extract_strided_slice %51 {offsets = [0, 1], sizes = [32, 255], strides = [1, 1]} : vector<32x256xf32> to vector<32x255xf32>
      %59 = tpu.concatenate %58, %21 in 1 : vector<32x255xf32>, vector<32x1xf32> -> vector<32x256xf32>
      %cst_25 = arith.constant 0.000000e+00 : f32
      %60 = vector.shape_cast %20 : vector<1x256xi1> to vector<1x256xi1>
      %61 = vector.broadcast %60 : vector<1x256xi1> to vector<32x256xi1>
      %62 = vector.broadcast %cst_25 : f32 to vector<32x256xf32>
      %63 = arith.select %61, %59, %62 : vector<32x256xi1>, vector<32x256xf32>
      %64 = tpu.concatenate %22, %57, %22 in 1 : vector<32x16xf32>, vector<32x256xf32>, vector<32x16xf32> -> vector<32x288xf32>
      %65 = tpu.concatenate %22, %51, %22 in 1 : vector<32x16xf32>, vector<32x256xf32>, vector<32x16xf32> -> vector<32x288xf32>
      %66 = tpu.concatenate %22, %63, %22 in 1 : vector<32x16xf32>, vector<32x256xf32>, vector<32x16xf32> -> vector<32x288xf32>
      %cst_26 = arith.constant 0.000000e+00 : f32
      %67 = vector.broadcast %cst_26 : f32 to vector<32x256xf32>
      %68 = vector.extract_strided_slice %64 {offsets = [0, 0], sizes = [32, 256], strides = [1, 1]} : vector<32x288xf32> to vector<32x256xf32>
      %69 = vector.broadcast %24 : vector<32x1xf32> to vector<32x256xf32>
      %70 = arith.mulf %68, %69 : vector<32x256xf32>
      %71 = arith.addf %67, %70 : vector<32x256xf32>
      %72 = vector.extract_strided_slice %65 {offsets = [0, 0], sizes = [32, 256], strides = [1, 1]} : vector<32x288xf32> to vector<32x256xf32>
      %73 = vector.broadcast %25 : vector<32x1xf32> to vector<32x256xf32>
      %74 = arith.mulf %72, %73 : vector<32x256xf32>
      %75 = arith.addf %71, %74 : vector<32x256xf32>
      %76 = vector.extract_strided_slice %66 {offsets = [0, 0], sizes = [32, 256], strides = [1, 1]} : vector<32x288xf32> to vector<32x256xf32>
      %77 = vector.broadcast %26 : vector<32x1xf32> to vector<32x256xf32>
      %78 = arith.mulf %76, %77 : vector<32x256xf32>
      %79 = arith.addf %75, %78 : vector<32x256xf32>
      %80 = vector.extract_strided_slice %64 {offsets = [0, 16], sizes = [32, 256], strides = [1, 1]} : vector<32x288xf32> to vector<32x256xf32>
      %81 = vector.broadcast %27 : vector<32x1xf32> to vector<32x256xf32>
      %82 = arith.mulf %80, %81 : vector<32x256xf32>
      %83 = arith.addf %79, %82 : vector<32x256xf32>
      %84 = vector.extract_strided_slice %65 {offsets = [0, 16], sizes = [32, 256], strides = [1, 1]} : vector<32x288xf32> to vector<32x256xf32>
      %85 = vector.broadcast %28 : vector<32x1xf32> to vector<32x256xf32>
      %86 = arith.mulf %84, %85 : vector<32x256xf32>
      %87 = arith.addf %83, %86 : vector<32x256xf32>
      %88 = vector.extract_strided_slice %66 {offsets = [0, 16], sizes = [32, 256], strides = [1, 1]} : vector<32x288xf32> to vector<32x256xf32>
      %89 = vector.broadcast %29 : vector<32x1xf32> to vector<32x256xf32>
      %90 = arith.mulf %88, %89 : vector<32x256xf32>
      %91 = arith.addf %87, %90 : vector<32x256xf32>
      %92 = vector.extract_strided_slice %64 {offsets = [0, 32], sizes = [32, 256], strides = [1, 1]} : vector<32x288xf32> to vector<32x256xf32>
      %93 = vector.broadcast %30 : vector<32x1xf32> to vector<32x256xf32>
      %94 = arith.mulf %92, %93 : vector<32x256xf32>
      %95 = arith.addf %91, %94 : vector<32x256xf32>
      %96 = vector.extract_strided_slice %65 {offsets = [0, 32], sizes = [32, 256], strides = [1, 1]} : vector<32x288xf32> to vector<32x256xf32>
      %97 = vector.broadcast %31 : vector<32x1xf32> to vector<32x256xf32>
      %98 = arith.mulf %96, %97 : vector<32x256xf32>
      %99 = arith.addf %95, %98 : vector<32x256xf32>
      %100 = vector.extract_strided_slice %66 {offsets = [0, 32], sizes = [32, 256], strides = [1, 1]} : vector<32x288xf32> to vector<32x256xf32>
      %101 = vector.broadcast %32 : vector<32x1xf32> to vector<32x256xf32>
      %102 = arith.mulf %100, %101 : vector<32x256xf32>
      %103 = arith.addf %99, %102 : vector<32x256xf32>
      %104 = vector.broadcast %33 : vector<32x1xf32> to vector<32x256xf32>
      %105 = arith.addf %103, %104 : vector<32x256xf32>
      %cst_27 = arith.constant 0.000000e+00 : f32
      %106 = vector.broadcast %cst_27 : f32 to vector<32x256xf32>
      %107 = arith.subf %106, %105 : vector<32x256xf32>
      %108 = math.exp %107 : vector<32x256xf32>
      %cst_28 = arith.constant 1.000000e+00 : f32
      %109 = vector.broadcast %cst_28 : f32 to vector<32x256xf32>
      %110 = arith.addf %109, %108 : vector<32x256xf32>
      %111 = tpu.reciprocal %110 {approx = true} : vector<32x256xf32> -> vector<32x256xf32>
      %112 = arith.mulf %105, %111 : vector<32x256xf32>
      %cst_29 = arith.constant dense<0.000000e+00> : vector<8x256xf32>
      %113 = tpu.matmul %34, %112, %cst_29 {dimension_numbers = #tpu.dot_dimension_numbers<[1], [0], [0], [1], [0, 0, 1, 1], [], []>} : vector<8x32xf32>, vector<32x256xf32>, vector<8x256xf32> -> vector<8x256xf32>
      %114 = vector.broadcast %35 : vector<8x1xf32> to vector<8x256xf32>
      %115 = arith.addf %113, %114 : vector<8x256xf32>
      %116 = arith.addf %115, %41 : vector<8x256xf32>
      %117 = arith.index_cast %arg9 : i32 to index
      %c0_30 = arith.constant 0 : index
      %c0_31 = arith.constant 0 : index
      %118 = vector.load %arg8[%117, %c0_30, %c0_31] : memref<2x8x256xf32, #tpu.memory_space<vmem>>, vector<1x8x256xf32>
      %119 = vector.shape_cast %118 : vector<1x8x256xf32> to vector<8x256xf32>
      %120 = vector.shape_cast %116 : vector<8x256xf32> to vector<1x8x256xf32>
      tpu.vector_store %arg8[%117, %c0_30, %c0_31], %120 {strides = array<i32>} : memref<2x8x256xf32, #tpu.memory_space<vmem>>, vector<1x8x256xf32>,
    }
    %c2_i32_18 = arith.constant 2 : i32
    return
  }
  func.func @transform_0(%arg0: i32) -> (i32, i32, i32) {
    %c0_i32 = arith.constant 0 : i32
    %c0_i32_0 = arith.constant 0 : i32
    %c0_i32_1 = arith.constant 0 : i32
    return %arg0, %c0_i32, %c0_i32_0 : i32, i32, i32
  }
  func.func @transform_1(%arg0: i32) -> (i32, i32) {
    %c0_i32 = arith.constant 0 : i32
    %c0_i32_0 = arith.constant 0 : i32
    %c0_i32_1 = arith.constant 0 : i32
    return %c0_i32, %c0_i32_0 : i32, i32
  }
  func.func @transform_2(%arg0: i32) -> (i32, i32) {
    %c0_i32 = arith.constant 0 : i32
    %c0_i32_0 = arith.constant 0 : i32
    %c0_i32_1 = arith.constant 0 : i32
    return %c0_i32, %c0_i32_0 : i32, i32
  }
  func.func @transform_3(%arg0: i32) -> (i32, i32) {
    %c0_i32 = arith.constant 0 : i32
    %c0_i32_0 = arith.constant 0 : i32
    %c0_i32_1 = arith.constant 0 : i32
    return %c0_i32, %c0_i32_0 : i32, i32
  }
  func.func @transform_4(%arg0: i32) -> (i32, i32) {
    %c0_i32 = arith.constant 0 : i32
    %c0_i32_0 = arith.constant 0 : i32
    %c0_i32_1 = arith.constant 0 : i32
    return %c0_i32, %c0_i32_0 : i32, i32
  }
  func.func @transform_5(%arg0: i32) -> (i32, i32) {
    %c0_i32 = arith.constant 0 : i32
    %c0_i32_0 = arith.constant 0 : i32
    %c0_i32_1 = arith.constant 0 : i32
    return %c0_i32, %c0_i32_0 : i32, i32
  }
  func.func @transform_6(%arg0: i32) -> (i32, i32) {
    %c0_i32 = arith.constant 0 : i32
    %c0_i32_0 = arith.constant 0 : i32
    %c0_i32_1 = arith.constant 0 : i32
    return %c0_i32, %c0_i32_0 : i32, i32
  }
  func.func @transform_7(%arg0: i32) -> (i32, i32, i32) {
    %c0_i32 = arith.constant 0 : i32
    %c0_i32_0 = arith.constant 0 : i32
    %c0_i32_1 = arith.constant 0 : i32
    return %arg0, %c0_i32, %c0_i32_0 : i32, i32, i32
  }
}

</mosaic_0001>

<bundles_post_ra>
// kernel: tpu_custom_call.1
= control target key start
LH: loop header
LB: loop body
LE: loop exit
PB: predicated region body
PF: predicated region fallthrough
CT: control target
= control target key end

     0   :  { %12 = vsyncpa [#allocation3], 0  ;;  %s2837_s0 = inlined_call_operand.vmem [shape: f32[4,8,256], index: 0, kind: input, shape index: {}]   ;;  %s2838_s1 = inlined_call_operand.vmem [shape: f32[32,8], index: 1, kind: input, shape index: {}]   ;;  %s2839_s2 = inlined_call_operand.vmem [shape: f32[32,1], index: 2, kind: input, shape index: {}]   ;;  %s2840_s3 = inlined_call_operand.vmem [shape: f32[32,9], index: 3, kind: input, shape index: {}]   ;;  %s2841_s4 = inlined_call_operand.vmem [shape: f32[32,1], index: 4, kind: input, shape index: {}]   ;;  %s2842_s5 = inlined_call_operand.vmem [shape: f32[8,32], index: 5, kind: input, shape index: {}]   ;;  %s2843_s6 = inlined_call_operand.vmem [shape: f32[8,1], index: 6, kind: input, shape index: {}]   ;;  %s2844_s7 = inlined_call_operand.hbm [shape: f32[4,8,256], index: 7, kind: output, shape index: {}]  }
   0x1   :  { %14 = vsyncpa [#allocation3 + $0x1], 0  ;;  %s1951_s24 = smov 0   ;;  %s1953_s25 = smov 0  }
   0x2   :  { %s1955_s26 = smov 0   ;;  %s1957_s27 = smov 0  }
   0x3 LB: > { %s1972_s28 = sadd.s32 4294967295, %s1887_s27   ;;  %s1626_s29 = sadd.s32 4294967294, %s1887_s27   ;;  %s1887_s27 = sphi %s1957_s27, %s2890_s27   ;;  %s1883_s26 = sphi %s1955_s26, %s2889_s26   ;;  %s1879_s25 = sphi %s1953_s25, %s2888_s25   ;;  %s1875_s24 = sphi %s1951_s24, %s2887_s24  }
   0x4   : > { %s1976_s30 = sadd.s32 1, %s1887_s27   ;;  %s179_s8 = sadd.s32 1, %s1883_s26 }
   0x5   : > { %s176_s9 = ssub.s32 %s1887_s27, %s1976_s30  ;;  %p189_p0 = scmp.ne.s32.totalorder %s1883_s26, %s1879_s25 }
   0x6   : > { %p177_p1 = scmp.eq.s32.totalorder %s176_s9, 0  ;;  %p190_p2 = scmp.eq.s32.totalorder %s1972_s28, 1 }
   0x7   : > { %p195_p3 = scmp.ne.s32.totalorder %s1879_s25, %s1875_s24  ;;  %p196_p4 = scmp.eq.s32.totalorder %s1626_s29, 1 }
   0x8   : > { %s1987_s10 = scalar_select %p177_p1, %s1883_s26, %s179_s8  }
   0x9   : > { %p1989_p5 = por %p190_p2, %p189_p0  ;;  %p1993_p6 = por %p196_p4, %p195_p3 }
   0xa   : > { %p1629_p7 = scmp.ge.s32.totalorder %s1887_s27, 1  ;;  %p242_p8 = scmp.lt.s32.totalorder %s1887_s27, 3 }
   0xc   : > { %p243_p9 = pnand %p1629_p7, %p242_p8 }
   0xe   : > { %246 = sbr.rel (%p243_p9) target bundleno = 997 (0x3e5), region = 48 }
  0x15   : > { %s272_s13 = sand.u32 1, %s1879_s25   ;;  %s1631_s14 = sshll.u32 %s1972_s28, 1  ;;  %v283_v0 = vlaneseq  ;;  %v2004_v1 = vld [vmem:[%s2840_s3] sm:$0xff]  ;;  %v2009_v2 = vld [vmem:[%s2840_s3 + $0x8] sm:$0xff]  ;;  %v2014_v3 = vld [vmem:[%s2840_s3 + $0x10] sm:$0xff] }
  0x16   : > { %2851 = vst [vmem:[#allocation5_spill] sm:$0xff] %v2004_v1  ;;  %2852 = vst [vmem:[#allocation6_spill] sm:$0xff] %v2009_v2  ;;  %s2018_s21 = sshll.u32 %s272_s13, 5  ;;  %p276_p10 = scmp.lt.s32.totalorder %s1631_s14, 3  ;;  %v2023_v4 = vld [vmem:[%s2840_s3 + $0x18] sm:$0xff]  ;;  %v2028_v5 = vld [vmem:[%s2841_s4] sm:$0xff] }
  0x17   : > { %2853 = vst [vmem:[#allocation7_spill] sm:$0xff] %v2014_v3  ;;  %2854 = vst [vmem:[#allocation8_spill] sm:$0xff] %v2023_v4  ;;  %v2033_v6 = vld [vmem:[%s2841_s4 + $0x8] sm:$0xff]  ;;  %v284_v7 = vand.u32 127, %v283_v0  ;;  %v2038_v8 = vld [vmem:[%s2841_s4 + $0x10] sm:$0xff]  ;;  %s2117_s23 = smov 0  }
  0x18   : > { %2855 = vst [vmem:[#allocation9_spill] sm:$0xff] %v2028_v5  ;;  %2856 = vst [vmem:[#allocation10_spill] sm:$0xff] %v2033_v6  ;;  %v2043_v9 = vld [vmem:[%s2841_s4 + $0x18] sm:$0xff]  ;;  %v2048_v10 = vld [vmem:[%s2842_s5] sm:$0xff]  ;;  %s2892_s14 = smov (!%p276_p10, %s1631_s14), 3 }
  0x19   : > { %2857 = vst [vmem:[#allocation11_spill] sm:$0xff] %v2038_v8  ;;  %2858 = vst [vmem:[#allocation12_spill] sm:$0xff] %v2043_v9  ;;  %v2053_v11 = vld [vmem:[%s2843_s6] sm:$0xff]  ;;  %v2063_v13 = vld [vmem:[%s2838_s1 + $0x8] sm:$0xff]  ;;  %v285_v14 = vadd.s32 128, %v284_v7  ;;  %v290_v15 = vand.u32 15, %v284_v7 }
  0x1a   : > { %v2058_v12 = vld [vmem:[%s2838_s1] sm:$0xff]  ;;  %2860 = vst [vmem:[#allocation14_spill] sm:$0xff] %v2063_v13  ;;  %v2068_v16 = vld [vmem:[%s2838_s1 + $0x10] sm:$0xff]  ;;  %v2073_v17 = vld [vmem:[%s2838_s1 + $0x18] sm:$0xff]  ;;  %s1648_s29 = sshll.u32 %s2892_s14, 4  ;;  %s274_s14 = scalar_lea.vmem [#allocation2], %s2018_s21 }
  0x1b   : > { %2859 = vst [vmem:[#allocation13_spill] sm:$0xff] %v2058_v12  ;;  %2861 = vst [vmem:[#allocation15_spill] sm:$0xff] %v2068_v16  ;;  %v2078_v18 = vld [vmem:[%s2839_s2] sm:$0xff]  ;;  %v2083_v19 = vld [vmem:[%s2839_s2 + $0x8] sm:$0xff]  ;;  %s2098_s22 = scalar_lea.vmem %s2837_s0, %s1648_s29  ;;  %v297_v22 = vand.u32 15, %v285_v14  ;;  %vm2100_vm0 = vcmp.gt.s32.totalorder %v290_v15, 0 }
  0x1c   : > { %2862 = vst [vmem:[#allocation16_spill] sm:$0xff] %v2073_v17  ;;  %2863 = vst [vmem:[#allocation17_spill] sm:$0xff] %v2078_v18  ;;  %v2088_v20 = vld [vmem:[%s2839_s2 + $0x10] sm:$0xff]  ;;  %v2093_v21 = vld [vmem:[%s2839_s2 + $0x18] sm:$0xff]  ;;  %vm2104_vm1 = vcmp.lt.s32.totalorder %v290_v15, 15 }
  0x1d   : > { %2864 = vst [vmem:[#allocation18_spill] sm:$0xff] %v2083_v19  ;;  %vm2108_vm2 = vcmp.gt.s32.totalorder %v297_v22, 0  ;;  %vm2112_vm3 = vcmp.lt.s32.totalorder %v297_v22, 15 }
  0x1e LB: >> { %v2873_v4 = vld [vmem:[#allocation8_spill] sm:$0xff]  ;;  %v2874_v3 = vld [vmem:[#allocation7_spill] sm:$0xff]  ;;  %v2875_v2 = vld [vmem:[#allocation6_spill] sm:$0xff]  ;;  %v1893_v27 = vmov 0.0   ;;  %v1894_v28 = vmov 0   ;;  %s1649_s29 = sshll.u32 %s1891_s23, 4  ;;  %s1891_s23 = sphi %s2117_s23, %s337_s23  }
  0x1f   : >> { %v2876_v1 = vld [vmem:[#allocation5_spill] sm:$0xff]  ;;  %440 = vmatprep.mubr.f32.mxu0 %v1893_v27  ;;  %1725 = vset.pattern.permute.xlu0 %v1894_v28  ;;  %s2129_s8 = scalar_lea.vmem %s2098_s22, %s1649_s29  ;;  %vm363_vm4 = vcmask 64512   ;;  %v1895_v31 = vmov 3   ;;  %v1896_v32 = vmov 4   ;;  %v1897_v33 = vmov 5   ;;  %v2885_v6 = vld [vmem:[#allocation10_spill] sm:$0xff]  ;;  %s1537_s19 = scalar_lea.vmem %s274_s14, %s1649_s29 [#allocation2] }
  0x20   : >> { %1726 = vset.pattern.permute.xlu1 %v1894_v28  ;;  %1527 = vmatprep.mubr.f32.mxu1 %v1893_v27  ;;  %v342_v29 = vld [vmem:[%s2129_s8 + $0x8] sm:$0xff]  ;;  %v341_v30 = vld [vmem:[%s2129_s8] sm:$0xff]  ;;  %v1898_v34 = vmov 6   ;;  %v1899_v35 = vmov 7   ;;  %v1900_v36 = vmov 8   ;;  %v1901_v37 = vmov 1  }
  0x21   : >> { %355 = vperm.xlu1 %1726, %v2088_v20   ;;  %376 = vmatprep.subr.mxu0 %v342_v29  ;;  %v2880_v13 = vld [vmem:[#allocation14_spill] sm:$0xff]  ;;  %v1902_v38 = vmov 2   ;;  %v2883_v5 = vld [vmem:[#allocation9_spill] sm:$0xff]  ;;  %v2884_v9 = vld [vmem:[#allocation12_spill] sm:$0xff]  ;;  %s1903_s9 = smov 1   ;;  %s1904_s15 = smov 127  }
  0x22   : >> { %377 = vmatpush1.msra.mxu0 %v341_v30  ;;  %v2879_v12 = vld [vmem:[#allocation13_spill] sm:$0xff]  ;;  %v2881_v16 = vld [vmem:[#allocation15_spill] sm:$0xff]  ;;  %s1905_s16 = smov 16   ;;  %vm537_vm5 = vcmask 7168   ;;  %vm582_vm6 = vcmask 1039360   ;;  %vm635_vm7 = vcmask 130048  }
  0x23   : >> { %v2877_v18 = vld [vmem:[#allocation17_spill] sm:$0xff]  ;;  %1636 = vmatmul.mubr.msk.f32.vlgmr.msra.gmra.mrb[0].mxu0 %vm363_vm4, %v2879_v12  ;;  %v2882_v17 = vld [vmem:[#allocation16_spill] sm:$0xff]  ;;  %v2886_v8 = vld [vmem:[#allocation11_spill] sm:$0xff]  ;;  %s1906_s17 = smov 96   ;;  %s1907_s18 = smov 112   ;;  %vm912_vm8 = vcmask 916480  }
  0x24   : >> { %345 = vperm.xlu0 %1725, %v2877_v18   ;;  %v2878_v19 = vld [vmem:[#allocation18_spill] sm:$0xff]  ;;  %446 = vmatprep.mubr.f32.mxu0 %v1893_v27  ;;  %vm1177_vm9 = vcmask 785408   ;;  %vm1459_vm10 = vcmask 261120   ;;  %s337_s23 = sadd.s32 1, %s1891_s23  }
  0x25   : >> { %360 = vperm.xlu1 %1726, %v2093_v21   ;;  %p334_p11 = scmp.ge.s32.totalorder %s337_s23, 2  }
  0x26   : > { %s1652_s20 = sshll.u32 (%p334_p11), %s1972_s28, 9  ;;  %s2796_s23 = scalar_lea.sflag (%p334_p11), [#allocation3], %s272_s13 }
  0x27   : >> { %1637 = vmatmul.mubr.msk.f32.gmra.mrb[2].mxu0 %vm363_vm4, %v2880_v13  ;;  %s1908_s28 = smov (%p334_p11), [#allocation2]  }
  0x28   : >> { %350 = vperm.xlu0 %1725, %v2878_v19   ;;  %452 = vmatprep.mubr.f32.mxu0 %v1893_v27 }
  0x29   : >> { %1728 = vset.pattern.permute.xlu1 %v1895_v31 }
  0x2a   : >> { %853 = vperm.xlu1 %1728, %v2875_v2  }
  0x2b   : >> { %1638 = vmatmul.mubr.msk.f32.gmra.mrb[4].mxu0 %vm363_vm4, %v2881_v16 }
  0x2c   : >> { %1727 = vset.pattern.permute.xlu0 %v1895_v31  ;;  %458 = vmatprep.mubr.f32.mxu0 %v1893_v27 }
  0x2d   : >> { %849 = vperm.xlu0 %1727, %v2876_v1  }
  0x2e   : >> { %1729 = vset.pattern.permute.xlu1 %v1896_v32 }
  0x2f   : >> { %938 = vperm.xlu1 %1729, %v2876_v1   ;;  %1639 = vmatmul.mubr.msk.f32.gmra.mrb[6].mxu0 %vm363_vm4, %v2882_v17 }
  0x31   : >> { %1730 = vset.pattern.permute.xlu0 %v1896_v32 }
  0x32   : >> { %942 = vperm.xlu0 %1730, %v2875_v2  }
  0x33   : >> { %1731 = vset.pattern.permute.xlu1 %v1895_v31 }
  0x34   : >> { %857 = vperm.xlu1 %1731, %v2874_v3  }
  0x36   : >> { %950 = vperm.xlu0 %1730, %v2873_v4  }
  0x38   : >> { %861 = vperm.xlu1 %1731, %v2873_v4  }
  0x3a   : >> { %1734 = vset.pattern.permute.xlu0 %v1897_v33 }
  0x3b   : >> { %1026 = vperm.xlu0 %1734, %v2876_v1  }
  0x3c   : >> { %1732 = vset.pattern.permute.xlu1 %v1897_v33 }
  0x3d   : >> { %1030 = vperm.xlu1 %1732, %v2875_v2  }
  0x3f   : >> { %1034 = vperm.xlu0 %1734, %v2874_v3  }
  0x41   : >> { %1733 = vset.pattern.permute.xlu1 %v1896_v32 }
  0x42   : >> { %946 = vperm.xlu1 %1733, %v2874_v3  }
  0x43   : >> { %1738 = vset.pattern.permute.xlu0 %v1898_v34 }
  0x44   : >> { %1122 = vperm.xlu0 %1738, %v2874_v3  }
  0x46   : >> { %1735 = vset.pattern.permute.xlu1 %v1898_v34 }
  0x47   : >> { %1114 = vperm.xlu1 %1735, %v2876_v1  }
  0x48   : >> { %1739 = vset.pattern.permute.xlu0 %v1899_v35 }
  0x49   : >> { %1207 = vperm.xlu0 %1739, %v2875_v2  }
  0x4b   : >> { %1118 = vperm.xlu1 %1735, %v2875_v2  }
  0x4d   : >> { %1211 = vperm.xlu0 %1739, %v2874_v3  }
  0x4f   : >> { %1736 = vset.pattern.permute.xlu1 %v1897_v33 }
  0x50   : >> { %1038 = vperm.xlu1 %1736, %v2873_v4  }
  0x51   : >> { %1742 = vset.pattern.permute.xlu0 %v1900_v36 }
  0x52   : >> { %1295 = vperm.xlu0 %1742, %v2875_v2  }
  0x54   : >> { %1737 = vset.pattern.permute.xlu1 %v1899_v35 }
  0x55   : >> { %1203 = vperm.xlu1 %1737, %v2876_v1  }
  0x56   : >> { %1303 = vperm.xlu0 %1742, %v2873_v4  }
  0x59   : >> { %1740 = vset.pattern.permute.xlu1 %v1898_v34 }
  0x5a   : >> { %1746 = vset.pattern.permute.xlu0 %v1901_v37  ;;  %1126 = vperm.xlu1 %1740, %v2873_v4  }
  0x5b   : >> { %785 = vperm.xlu0 %1746, %v2876_v1  }
  0x5e   : >> { %1741 = vset.pattern.permute.xlu1 %v1900_v36 }
  0x5f   : >> { %793 = vperm.xlu0 %1746, %v2874_v3   ;;  %1291 = vperm.xlu1 %1741, %v2876_v1  }
  0x63   : >> { %1750 = vset.pattern.permute.xlu0 %v1902_v38  ;;  %1743 = vset.pattern.permute.xlu1 %v1899_v35 }
  0x64   : >> { %821 = vperm.xlu0 %1750, %v2875_v2   ;;  %1215 = vperm.xlu1 %1743, %v2873_v4  }
  0x68   : >> { %829 = vperm.xlu0 %1750, %v2873_v4   ;;  %1744 = vset.pattern.permute.xlu1 %v1900_v36 }
  0x69   : >> { %1299 = vperm.xlu1 %1744, %v2874_v3  }
  0x6c   : >> { %1753 = vset.pattern.permute.xlu0 %v1894_v28 }
  0x6d   : >> { %1380 = vperm.xlu0 %1753, %v2883_v5   ;;  %1745 = vset.pattern.permute.xlu1 %v1894_v28 }
  0x6e   : >> { %750 = vperm.xlu1 %1745, %v2876_v1  }
  0x71   : >> { %1395 = vperm.xlu0 %1753, %v2884_v9  }
  0x72   : >> { %755 = vperm.xlu1 %1745, %v2875_v2  }
  0x76   : >> { %1747 = vset.pattern.permute.xlu1 %v1901_v37 }
  0x77   : >> { %789 = vperm.xlu1 %1747, %v2875_v2  }
  0x7b   : >> { %1748 = vset.pattern.permute.xlu1 %v1902_v38 }
  0x7c   : >> { %817 = vperm.xlu1 %1748, %v2876_v1  }
  0x80   : >> { %1749 = vset.pattern.permute.xlu1 %v1894_v28 }
  0x81   : >> { %760 = vperm.xlu1 %1749, %v2874_v3  }
  0x85   : >> { %765 = vperm.xlu1 %1749, %v2873_v4  }
  0x89   : >> { %1751 = vset.pattern.permute.xlu1 %v1901_v37 }
  0x8a   : >> { %797 = vperm.xlu1 %1751, %v2873_v4  }
  0x8e   : >> { %1752 = vset.pattern.permute.xlu1 %v1902_v38 }
  0x8f   : >> { %825 = vperm.xlu1 %1752, %v2874_v3  }
  0x93   : >> { %1754 = vset.pattern.permute.xlu1 %v1894_v28 }
  0x94   : >> { %1385 = vperm.xlu1 %1754, %v2885_v6  }
  0x98   : >> { %1390 = vperm.xlu1 %1754, %v2886_v8  }
  0xa0   : >> { %v356_v44 = vpop.permute.xlu1 %355 }
  0xa3   : >> { %v346_v39 = vpop.permute.xlu0 %345 }
  0xa4   : >> { %v361_v57 = vpop.permute.xlu1 %360 }
  0xa7   : >> { %v351_v46 = vpop.permute.xlu0 %350 }
  0xa9   : >> { %v2194_v62 = vpop.permute.xlu1 %853 }
  0xae   : >> { %v2201_v28 = vpop.permute.xlu1 %938 }
  0xb3   : >> { %v2206_v35 = vpop.permute.xlu1 %857 }
  0xf6   : >> { %v442_v40 = vpop.f32.mrb[0].mxu0 }
  0xf7   : >> { %v443_v41 = vadd.f32 %v442_v40, %v346_v39  ;;  %v444_v42 = vpop.f32.mrb[1].mxu0 }
  0xf8   : >> { %v445_v43 = vadd.f32 %v444_v42, %v346_v39 }
  0xf9   : >> { %v465_v45 = vsub.f32 0.0, %v443_v41 }
  0xfa   : >> { %v466_v47 = vsub.f32 0.0, %v445_v43  ;;  %v448_v48 = vpop.f32.mrb[2].mxu0 }
  0xfb   : >> { %v473_v49 = vmul.f32 1.442695, %v465_v45  ;;  %v2188_v50 = vadd.f32 %v448_v48, %v351_v46  ;;  %v450_v51 = vpop.f32.mrb[3].mxu0  ;;  %v2211_v45 = vpop.permute.xlu1 %861 }
  0xfc   : >> { %v475_v52 = vmul.f32 1.442695, %v466_v47  ;;  %v2190_v53 = vadd.f32 %v450_v51, %v351_v46 }
  0xfd   : >> { %1755 = vpow2.f32 %v473_v49  ;;  %v467_v54 = vsub.f32 0.0, %v2188_v50 }
  0xfe   : >> { %1757 = vpow2.f32 %v475_v52  ;;  %v468_v55 = vsub.f32 0.0, %v2190_v53  ;;  %v454_v56 = vpop.f32.mrb[4].mxu0 }
  0xff   : >> { %v477_v58 = vmul.f32 1.442695, %v467_v54  ;;  %v456_v59 = vpop.f32.mrb[5].mxu0  ;;  %v2196_v63 = vadd.f32 %v454_v56, %v356_v44  ;;  %v2216_v51 = vpop.permute.xlu1 %1030 }
 0x100   : >> { %v479_v60 = vmul.f32 1.442695, %v468_v55  ;;  %v2199_v15 = vadd.f32 %v456_v59, %v356_v44 }
 0x101   : >> { %1759 = vpow2.f32 %v477_v58  ;;  %v469_v14 = vsub.f32 0.0, %v2196_v63 }
 0x102   : >> { %v460_v61 = vpop.f32.mrb[6].mxu0  ;;  %1761 = vpow2.f32 %v479_v60  ;;  %v470_v31 = vsub.f32 0.0, %v2199_v15 }
 0x103   : >> { %v462_v0 = vpop.f32.mrb[7].mxu0  ;;  %v481_v30 = vmul.f32 1.442695, %v469_v14  ;;  %v2204_v32 = vadd.f32 %v460_v61, %v361_v57  ;;  %v2220_v56 = vpop.permute.xlu1 %946 }
 0x104   : >> { %v483_v36 = vmul.f32 1.442695, %v470_v31  ;;  %v2209_v42 = vadd.f32 %v462_v0, %v361_v57 }
 0x105   : >> { %v471_v37 = vsub.f32 0.0, %v2204_v32 }
 0x106   : >> { %v472_v49 = vsub.f32 0.0, %v2209_v42 }
 0x107   : >> { %v1756_v7 = vpop.eup %1755  ;;  %v485_v40 = vmul.f32 1.442695, %v471_v37 }
 0x108   : >> { %v1758_v22 = vpop.eup %1757  ;;  %v489_v27 = vadd.f32 1.0, %v1756_v7  ;;  %v487_v54 = vmul.f32 1.442695, %v472_v49  ;;  %v2228_v7 = vpop.permute.xlu1 %1114 }
 0x109   : >> { %v490_v29 = vadd.f32 1.0, %v1758_v22 }
 0x10a   : >> { %1763 = vrcp.f32 %v489_v27 }
 0x10b   : >> { %1765 = vrcp.f32 %v490_v29  ;;  %v1760_v33 = vpop.eup %1759  ;;  %v2237_v29 = vpop.permute.xlu0 %849 }
 0x10c   : >> { %v1762_v34 = vpop.eup %1761  ;;  %1767 = vpow2.f32 %v481_v30  ;;  %v491_v38 = vadd.f32 1.0, %v1760_v33  ;;  %v2232_v27 = vpop.permute.xlu1 %1118 }
 0x10d   : >> { %v492_v39 = vadd.f32 1.0, %v1762_v34  ;;  %1769 = vpow2.f32 %v483_v36 }
 0x10e   : >> { %1771 = vrcp.f32 %v491_v38 }
 0x10f   : >> { %1773 = vrcp.f32 %v492_v39  ;;  %v2245_v36 = vpop.permute.xlu0 %942 }
 0x110   : >> { %1775 = vpow2.f32 %v485_v40  ;;  %v2239_v30 = vpop.permute.xlu1 %1038 }
 0x111   : >> { %1777 = vpow2.f32 %v487_v54 }
 0x113   : >> { %v2253_v38 = vpop.permute.xlu0 %950 }
 0x114   : >> { %v1764_v44 = vpop.eup %1763 }
 0x115   : >> { %v1766_v46 = vpop.eup %1765  ;;  %v505_v47 = vmul.f32 %v1764_v44, %v443_v41 }
 0x116   : >> { %v506_v48 = vmul.f32 %v1766_v46, %v445_v43  ;;  %v1768_v52 = vpop.eup %1767 }
 0x117   : >> { %521 = vrot.lane.b32.xlu0 %v505_v47, %s1903_s9  ;;  %v493_v55 = vadd.f32 1.0, %v1768_v52  ;;  %v1770_v41 = vpop.eup %1769  ;;  %v2261_v44 = vpop.permute.xlu0 %1026 }
 0x118   : >> { %523 = vrot.lane.b32.xlu1 %v506_v48, %s1903_s9  ;;  %v1772_v43 = vpop.eup %1771  ;;  %v494_v60 = vadd.f32 1.0, %v1770_v41 }
 0x119   : >> { %v1774_v57 = vpop.eup %1773  ;;  %1779 = vrcp.f32 %v493_v55  ;;  %v507_v59 = vmul.f32 %v1772_v43, %v2188_v50 }
 0x11a   : >> { %v1776_v58 = vpop.eup %1775  ;;  %v508_v61 = vmul.f32 %v1774_v57, %v2190_v53  ;;  %1781 = vrcp.f32 %v494_v60 }
 0x11b   : >> { %566 = vrot.lane.b32.xlu0 %v505_v47, %s1904_s15  ;;  %v495_v0 = vadd.f32 1.0, %v1776_v58  ;;  %v1778_v14 = vpop.eup %1777  ;;  %v2267_v46 = vpop.permute.xlu0 %1034 }
 0x11c   : >> { %568 = vrot.lane.b32.xlu1 %v506_v48, %s1904_s15  ;;  %v496_v53 = vadd.f32 1.0, %v1778_v14 }
 0x11d   : >> { %1783 = vrcp.f32 %v495_v0 }
 0x11e   : >> { %1785 = vrcp.f32 %v496_v53 }
 0x11f   : >> { %660 = vrot.lane.b32.xlu0 %v505_v47, %s1905_s16 }
 0x120   : >> { %662 = vrot.lane.b32.xlu1 %v506_v48, %s1905_s16  ;;  %v2272_v48 = vpop.permute.xlu0 %1122 }
 0x123   : >> { %525 = vrot.lane.b32.xlu0 %v507_v59, %s1903_s9  ;;  %v1780_v22 = vpop.eup %1779 }
 0x124   : >> { %527 = vrot.lane.b32.xlu1 %v508_v61, %s1903_s9  ;;  %v509_v50 = vmul.f32 %v1780_v22, %v2196_v63  ;;  %v1782_v31 = vpop.eup %1781  ;;  %v2248_v63 = vpop.permute.xlu1 %1203 }
 0x125   : >> { %v510_v34 = vmul.f32 %v1782_v31, %v2199_v15 }
 0x127   : >> { %570 = vrot.lane.b32.xlu0 %v507_v59, %s1904_s15  ;;  %v1784_v33 = vpop.eup %1783 }
 0x128   : >> { %572 = vrot.lane.b32.xlu1 %v508_v61, %s1904_s15  ;;  %v511_v37 = vmul.f32 %v1784_v33, %v2204_v32  ;;  %v2255_v39 = vpop.permute.xlu1 %1126  ;;  %v1786_v40 = vpop.eup %1785 }
 0x129   : >> { %v512_v15 = vmul.f32 %v1786_v40, %v2209_v42  ;;  %v2276_v42 = vpop.permute.xlu0 %1207 }
 0x12b   : >> { %664 = vrot.lane.b32.xlu0 %v507_v59, %s1905_s16 }
 0x12c   : >> { %666 = vrot.lane.b32.xlu1 %v508_v61, %s1905_s16  ;;  %v2264_v32 = vpop.permute.xlu1 %1291 }
 0x12d   : >> { %v2280_v54 = vpop.permute.xlu0 %1211 }
 0x12f   : >> { %529 = vrot.lane.b32.xlu0 %v509_v50, %s1903_s9 }
 0x130   : >> { %668 = vrot.lane.b32.xlu1 %v509_v50, %s1905_s16  ;;  %v2269_v47 = vpop.permute.xlu1 %1215 }
 0x131   : >> { %v2284_v41 = vpop.permute.xlu0 %1295 }
 0x133   : >> { %574 = vrot.lane.b32.xlu0 %v509_v50, %s1904_s15 }
 0x134   : >> { %531 = vrot.lane.b32.xlu1 %v510_v34, %s1903_s9  ;;  %v2274_v49 = vpop.permute.xlu1 %1299 }
 0x135   : >> { %v2288_v57 = vpop.permute.xlu0 %1303 }
 0x137   : >> { %533 = vrot.lane.b32.xlu0 %v511_v37, %s1903_s9 }
 0x138   : >> { %576 = vrot.lane.b32.xlu1 %v510_v34, %s1904_s15  ;;  %v2278_v52 = vpop.permute.xlu1 %750 }
 0x139   : >> { %v2292_v59 = vpop.permute.xlu0 %785 }
 0x13b   : >> { %578 = vrot.lane.b32.xlu0 %v511_v37, %s1904_s15 }
 0x13c   : >> { %670 = vrot.lane.b32.xlu1 %v510_v34, %s1905_s16  ;;  %v2282_v55 = vpop.permute.xlu1 %755 }
 0x13d   : >> { %v2296_v61 = vpop.permute.xlu0 %793 }
 0x13f   : >> { %672 = vrot.lane.b32.xlu0 %v511_v37, %s1905_s16 }
 0x140   : >> { %535 = vrot.lane.b32.xlu1 %v512_v15, %s1903_s9  ;;  %v2286_v43 = vpop.permute.xlu1 %789 }
 0x141   : >> { %v2302_v22 = vpop.permute.xlu0 %821 }
 0x144   : >> { %580 = vrot.lane.b32.xlu1 %v512_v15, %s1904_s15  ;;  %v2290_v58 = vpop.permute.xlu1 %817  ;;  %s2788_s15 = scalar_lea.hbm (%p334_p11), %s2844_s7, %s1652_s20 }
 0x145   : >> { %v2306_v53 = vpop.permute.xlu0 %829 }
 0x148   : >> { %674 = vrot.lane.b32.xlu1 %v512_v15, %s1905_s16  ;;  %v2294_v60 = vpop.permute.xlu1 %760 }
 0x149   : >> { %v2310_v33 = vpop.permute.xlu0 %1380 }
 0x14c   : >> { %v2298_v0 = vpop.permute.xlu1 %765 }
 0x14d   : >> { %v2314_v37 = vpop.permute.xlu0 %1395 }
 0x150   : >> { %v2300_v14 = vpop.permute.xlu1 %797 }
 0x154   : >> { %v2304_v50 = vpop.permute.xlu1 %825 }
 0x158   : >> { %v2308_v31 = vpop.permute.xlu1 %1385 }
 0x15c   : >> { %v2312_v34 = vpop.permute.xlu1 %1390 }
 0x189   : >> { %v522_v40 = vpop.permute.xlu0 %521 }
 0x18a   : >> { %v524_v15 = vpop.permute.xlu1 %523  ;;  %v550_v1 = vsel %vm537_vm5, 0.0, %v522_v40 }
 0x18b   : >> { %v538_v2 = vsel %vm537_vm5, %v522_v40, %v524_v15  ;;  %v558_v3 = vsel %vm2100_vm0, %v550_v1, 0.0 }
 0x18c   : >> { %619 = vrot.lane.b32.xlu1 %v558_v3, %s1905_s16  ;;  %v559_v4 = vsel %vm2108_vm2, %v538_v2, 0.0 }
 0x18d   : >> { %621 = vrot.lane.b32.xlu0 %v559_v4, %s1905_s16  ;;  %v567_v5 = vpop.permute.xlu0 %566 }
 0x18e   : >> { %v569_v6 = vpop.permute.xlu1 %568 }
 0x18f   : >> { %v595_v8 = vsel %vm582_vm6, %v569_v6, 0.0  ;;  %v583_v9 = vsel %vm582_vm6, %v567_v5, %v569_v6 }
 0x190   : >> { %v604_v40 = vsel %vm2112_vm3, %v595_v8, 0.0  ;;  %v603_v1 = vsel %vm2104_vm1, %v583_v9, 0.0 }
 0x191   : >> { %710 = vrot.lane.b32.xlu1 %v604_v40, %s1905_s16  ;;  %708 = vrot.lane.b32.xlu0 %v603_v1, %s1905_s16  ;;  %v661_v2 = vpop.permute.xlu0 %660 }
 0x192   : >> { %v2333_v3 = vsel %vm635_vm7, 0.0, %v661_v2  ;;  %v663_v4 = vpop.permute.xlu1 %662 }
 0x193   : >> { %v1218_v15 = vmul.f32 %v2248_v63, %v2333_v3  ;;  %v696_v5 = vsel %vm635_vm7, %v663_v4, 0.0  ;;  %v953_v6 = vmul.f32 %v2201_v28, %v2333_v3  ;;  %v2341_v8 = vsel %vm635_vm7, %v661_v2, %v663_v4 }
 0x194   : >> { %v955_v1 = vmul.f32 %v2201_v28, %v696_v5  ;;  %v954_v12 = vmul.f32 %v2201_v28, %v2341_v8  ;;  %v1219_v4 = vmul.f32 %v2248_v63, %v2341_v8 }
 0x195   : >> { %1242 = vrot.lane.b32.xlu1 %v1218_v15, %s1906_s17  ;;  %v526_v9 = vpop.permute.xlu0 %525  ;;  %977 = vrot.lane.b32.xlu0 %v953_v6, %s1907_s18  ;;  %v1220_v15 = vmul.f32 %v2248_v63, %v696_v5 }
 0x196   : >> { %v528_v40 = vpop.permute.xlu1 %527  ;;  %v551_v6 = vsel %vm537_vm5, 0.0, %v526_v9 }
 0x197   : >> { %v539_v16 = vsel %vm537_vm5, %v526_v9, %v528_v40 }
 0x198   : >> { %v561_v17 = vsel %vm2108_vm2, %v539_v16, 0.0 }
 0x199   : >> { %981 = vrot.lane.b32.xlu1 %v955_v1, %s1907_s18  ;;  %979 = vrot.lane.b32.xlu0 %v954_v12, %s1907_s18  ;;  %v571_v2 = vpop.permute.xlu0 %570  ;;  %v560_v1 = vsel %vm2100_vm0, %v551_v6, 0.0 }
 0x19a   : >> { %v573_v13 = vpop.permute.xlu1 %572 }
 0x19b   : >> { %v596_v63 = vsel %vm582_vm6, %v573_v13, 0.0 }
 0x19c   : >> { %v606_v40 = vsel %vm2112_vm3, %v596_v63, 0.0 }
 0x19d   : >> { %1244 = vrot.lane.b32.xlu1 %v1219_v4, %s1906_s17  ;;  %1246 = vrot.lane.b32.xlu0 %v1220_v15, %s1906_s17  ;;  %v665_v12 = vpop.permute.xlu0 %664  ;;  %v584_v4 = vsel %vm582_vm6, %v571_v2, %v573_v13 }
 0x19e   : >> { %v667_v28 = vpop.permute.xlu1 %666  ;;  %v2366_v9 = vsel %vm635_vm7, 0.0, %v665_v12  ;;  %v605_v15 = vsel %vm2104_vm1, %v584_v4, 0.0 }
 0x19f   : >> { %v697_v6 = vsel %vm635_vm7, %v667_v28, 0.0  ;;  %v1221_v13 = vmul.f32 %v2276_v42, %v2366_v9  ;;  %v2380_v2 = vsel %vm635_vm7, %v665_v12, %v667_v28 }
 0x1a0   : >> { %v958_v63 = vmul.f32 %v2245_v36, %v697_v6  ;;  %v1223_v12 = vmul.f32 %v2276_v42, %v697_v6 }
 0x1a1   : >> { %623 = vrot.lane.b32.xlu1 %v560_v1, %s1905_s16  ;;  %625 = vrot.lane.b32.xlu0 %v561_v17, %s1905_s16  ;;  %v956_v17 = vmul.f32 %v2245_v36, %v2366_v9  ;;  %v530_v1 = vpop.permute.xlu0 %529 }
 0x1a2   : >> { %v669_v5 = vpop.permute.xlu1 %668 }
 0x1a5   : >> { %714 = vrot.lane.b32.xlu1 %v606_v40, %s1905_s16  ;;  %712 = vrot.lane.b32.xlu0 %v605_v15, %s1905_s16  ;;  %v957_v40 = vmul.f32 %v2245_v36, %v2380_v2  ;;  %v1222_v15 = vmul.f32 %v2276_v42, %v2380_v2  ;;  %v575_v28 = vpop.permute.xlu0 %574 }
 0x1a6   : >> { %v532_v16 = vpop.permute.xlu1 %531 }
 0x1a9   : >> { %983 = vrot.lane.b32.xlu1 %v956_v17, %s1907_s18  ;;  %1248 = vrot.lane.b32.xlu0 %v1221_v13, %s1906_s17  ;;  %v552_v17 = vsel %vm537_vm5, 0.0, %v530_v1  ;;  %v534_v6 = vpop.permute.xlu0 %533 }
 0x1aa   : >> { %v577_v4 = vpop.permute.xlu1 %576  ;;  %v562_v36 = vsel %vm2100_vm0, %v552_v17, 0.0 }
 0x1ab   : >> { %v597_v18 = vsel %vm582_vm6, %v577_v4, 0.0  ;;  %v585_v17 = vsel %vm582_vm6, %v575_v28, %v577_v4  ;;  %v553_v4 = vsel %vm537_vm5, 0.0, %v534_v6 }
 0x1ac   : >> { %v608_v42 = vsel %vm2112_vm3, %v597_v18, 0.0  ;;  %v2415_v18 = vsel %vm635_vm7, 0.0, %v669_v5 }
 0x1ad   : >> { %987 = vrot.lane.b32.xlu1 %v958_v63, %s1907_s18  ;;  %985 = vrot.lane.b32.xlu0 %v957_v40, %s1907_s18  ;;  %v540_v63 = vsel %vm537_vm5, %v530_v1, %v532_v16  ;;  %v959_v28 = vmul.f32 %v2220_v56, %v2415_v18 }
 0x1ae   : >> { %v671_v13 = vpop.permute.xlu1 %670 }
 0x1af   : >> { %v2400_v40 = vsel %vm635_vm7, %v669_v5, %v671_v13  ;;  %v698_v16 = vsel %vm635_vm7, %v671_v13, 0.0  ;;  %v564_v5 = vsel %vm2100_vm0, %v553_v4, 0.0 }
 0x1b0   : >> { %v961_v4 = vmul.f32 %v2220_v56, %v698_v16  ;;  %v1225_v19 = vmul.f32 %v2280_v54, %v2400_v40 }
 0x1b1   : >> { %1250 = vrot.lane.b32.xlu1 %v1222_v15, %s1906_s17  ;;  %1252 = vrot.lane.b32.xlu0 %v1223_v12, %s1906_s17  ;;  %v563_v15 = vsel %vm2108_vm2, %v540_v63, 0.0  ;;  %v960_v12 = vmul.f32 %v2220_v56, %v2400_v40  ;;  %v607_v63 = vsel %vm2104_vm1, %v585_v17, 0.0  ;;  %v1224_v17 = vmul.f32 %v2280_v54, %v2415_v18 }
 0x1b2   : >> { %v536_v1 = vpop.permute.xlu1 %535 }
 0x1b5   : >> { %627 = vrot.lane.b32.xlu1 %v562_v36, %s1905_s16  ;;  %718 = vrot.lane.b32.xlu0 %v608_v42, %s1905_s16  ;;  %v579_v36 = vpop.permute.xlu0 %578  ;;  %v1226_v42 = vmul.f32 %v2280_v54, %v698_v16 }
 0x1b6   : >> { %v581_v13 = vpop.permute.xlu1 %580 }
 0x1b7   : >> { %v586_v54 = vsel %vm582_vm6, %v579_v36, %v581_v13 }
 0x1b9   : >> { %629 = vrot.lane.b32.xlu1 %v563_v15, %s1905_s16  ;;  %991 = vrot.lane.b32.xlu0 %v960_v12, %s1907_s18  ;;  %v673_v15 = vpop.permute.xlu0 %672  ;;  %v598_v12 = vsel %vm582_vm6, %v581_v13, 0.0 }
 0x1bd   : >> { %716 = vrot.lane.b32.xlu1 %v607_v63, %s1905_s16  ;;  %1258 = vrot.lane.b32.xlu0 %v1226_v42, %s1906_s17  ;;  %v2433_v63 = vsel %vm635_vm7, 0.0, %v673_v15  ;;  %v610_v42 = vsel %vm2112_vm3, %v598_v12, 0.0  ;;  %v541_v12 = vsel %vm537_vm5, %v534_v6, %v536_v1  ;;  %v609_v6 = vsel %vm2104_vm1, %v586_v54, 0.0 }
 0x1be   : >> { %v565_v56 = vsel %vm2108_vm2, %v541_v12, 0.0 }
 0x1c1   : >> { %989 = vrot.lane.b32.xlu1 %v959_v28, %s1907_s18  ;;  %631 = vrot.lane.b32.xlu0 %v564_v5, %s1905_s16  ;;  %v962_v28 = vmul.f32 %v2253_v38, %v2433_v63  ;;  %v675_v5 = vpop.permute.xlu1 %674 }
 0x1c5   : >> { %1254 = vrot.lane.b32.xlu1 %v1224_v17, %s1906_s17  ;;  %722 = vrot.lane.b32.xlu0 %v610_v42, %s1905_s16  ;;  %v1227_v17 = vmul.f32 %v2269_v47, %v2433_v63  ;;  %v2450_v42 = vsel %vm635_vm7, %v673_v15, %v675_v5 }
 0x1c6   : >> { %v963_v16 = vmul.f32 %v2253_v38, %v2450_v42  ;;  %v1228_v36 = vmul.f32 %v2269_v47, %v2450_v42 }
 0x1c9   : >> { %993 = vrot.lane.b32.xlu1 %v961_v4, %s1907_s18  ;;  %995 = vrot.lane.b32.xlu0 %v962_v28, %s1907_s18  ;;  %v699_v4 = vsel %vm635_vm7, %v675_v5, 0.0  ;;  %v800_v5 = vmul.f32 %v2292_v59, %v2333_v3 }
 0x1ca   : >> { %v964_v1 = vmul.f32 %v2253_v38, %v699_v4 }
 0x1cd   : >> { %1256 = vrot.lane.b32.xlu1 %v1225_v19, %s1906_s17  ;;  %1260 = vrot.lane.b32.xlu0 %v1227_v17, %s1906_s17  ;;  %v1229_v19 = vmul.f32 %v2269_v47, %v699_v4 }
 0x1d1   : >> { %633 = vrot.lane.b32.xlu1 %v565_v56, %s1905_s16  ;;  %997 = vrot.lane.b32.xlu0 %v963_v16, %s1907_s18  ;;  %v801_v56 = vmul.f32 %v2292_v59, %v2341_v8 }
 0x1d5   : >> { %720 = vrot.lane.b32.xlu1 %v609_v6, %s1905_s16  ;;  %1264 = vrot.lane.b32.xlu0 %v1229_v19, %s1906_s17  ;;  %s1825_s16 = sshll.u32 (%p334_p11), %s1908_s28, 4  ;;  %s1826_s16 = int_to_ptr.vmem [resolvable:$false] %s1825_s16 }
 0x1d9   : >> { %999 = vrot.lane.b32.xlu1 %v964_v1, %s1907_s18 }
 0x1dd   : >> { %1262 = vrot.lane.b32.xlu1 %v1228_v36, %s1906_s17 }
 0x1fe   : >> { %v620_v13 = vpop.permute.xlu1 %619 }
 0x1ff   : >> { %v652_v15 = vsel %vm635_vm7, 0.0, %v620_v13  ;;  %v622_v28 = vpop.permute.xlu0 %621 }
 0x200   : >> { %v768_v17 = vmul.f32 %v2278_v52, %v652_v15  ;;  %v1129_v12 = vmul.f32 %v2228_v7, %v652_v15  ;;  %v636_v38 = vsel %vm635_vm7, %v620_v13, %v622_v28  ;;  %v864_v54 = vmul.f32 %v2237_v29, %v652_v15 }
 0x201   : >> { %v769_v47 = vmul.f32 %v2278_v52, %v636_v38  ;;  %v865_v3 = vmul.f32 %v2237_v29, %v636_v38  ;;  %v656_v59 = vsel %vm635_vm7, %v622_v28, 0.0 }
 0x202   : >> { %v808_v16 = vadd.f32 %v800_v5, %v768_v17  ;;  %1153 = vrot.lane.b32.xlu1 %v1129_v12, %s1906_s17  ;;  %888 = vrot.lane.b32.xlu0 %v864_v54, %s1907_s18  ;;  %v866_v12 = vmul.f32 %v2237_v29, %v656_v59 }
 0x203   : >> { %v809_v4 = vadd.f32 %v801_v56, %v769_v47  ;;  %v711_v6 = vpop.permute.xlu1 %710  ;;  %v709_v19 = vpop.permute.xlu0 %708 }
 0x204   : >> { %v724_v1 = vsel %vm635_vm7, %v709_v19, %v711_v6  ;;  %v740_v36 = vsel %vm635_vm7, 0.0, %v709_v19  ;;  %v744_v28 = vsel %vm635_vm7, %v711_v6, 0.0  ;;  %v1130_v6 = vmul.f32 %v2228_v7, %v636_v38 }
 0x205   : >> { %v832_v52 = vmul.f32 %v2290_v58, %v740_v36  ;;  %v833_v8 = vmul.f32 %v2290_v58, %v724_v1  ;;  %v1042_v13 = vmul.f32 %v2261_v44, %v724_v1  ;;  %v1041_v47 = vmul.f32 %v2261_v44, %v740_v36 }
 0x206   : >> { %890 = vrot.lane.b32.xlu1 %v865_v3, %s1907_s18  ;;  %v1043_v54 = vmul.f32 %v2261_v44, %v744_v28  ;;  %v1131_v3 = vmul.f32 %v2228_v7, %v656_v59  ;;  %v1307_v38 = vmul.f32 %v2264_v32, %v724_v1  ;;  %v802_v59 = vmul.f32 %v2286_v43, %v2366_v9 }
 0x207   : >> { %v1243_v15 = vpop.permute.xlu1 %1242  ;;  %v2492_v5 = vadd.f32 %v832_v52, %v808_v16  ;;  %v2494_v17 = vadd.f32 %v833_v8, %v809_v4  ;;  %1067 = vrot.lane.b32.xlu0 %v1042_v13, %s1907_s18  ;;  %v978_v56 = vpop.permute.xlu0 %977  ;;  %v1308_v13 = vmul.f32 %v2264_v32, %v744_v28  ;;  %v803_v28 = vmul.f32 %v2286_v43, %v2380_v2 }
 0x20a   : >> { %892 = vrot.lane.b32.xlu1 %v866_v12, %s1907_s18 }
 0x20b   : >> { %v982_v58 = vpop.permute.xlu1 %981  ;;  %1065 = vrot.lane.b32.xlu0 %v1041_v47, %s1907_s18  ;;  %v980_v16 = vpop.permute.xlu0 %979 }
 0x20c   : >> { %v2504_v4 = vsel %vm912_vm8, %v978_v56, %v980_v16  ;;  %v2507_v29 = vsel %vm912_vm8, %v980_v16, %v982_v58 }
 0x20e   : >> { %1069 = vrot.lane.b32.xlu1 %v1043_v54, %s1907_s18 }
 0x20f   : >> { %v1245_v19 = vpop.permute.xlu1 %1244  ;;  %1155 = vrot.lane.b32.xlu0 %v1130_v6, %s1906_s17  ;;  %v1247_v44 = vpop.permute.xlu0 %1246  ;;  %v1306_v6 = vmul.f32 %v2264_v32, %v740_v36 }
 0x210   : >> { %v2513_v52 = vsel %vm1177_vm9, %v1243_v15, %v1245_v19  ;;  %v2517_v8 = vsel %vm1177_vm9, %v1245_v19, %v1247_v44 }
 0x212   : >> { %1157 = vrot.lane.b32.xlu1 %v1131_v3, %s1906_s17 }
 0x213   : >> { %v624_v12 = vpop.permute.xlu1 %623  ;;  %1334 = vrot.lane.b32.xlu0 %v1308_v13, %s1906_s17  ;;  %v626_v7 = vpop.permute.xlu0 %625 }
 0x214   : >> { %v653_v56 = vsel %vm635_vm7, 0.0, %v624_v12  ;;  %v637_v58 = vsel %vm635_vm7, %v624_v12, %v626_v7 }
 0x215   : >> { %v770_v15 = vmul.f32 %v2282_v55, %v653_v56  ;;  %v1132_v47 = vmul.f32 %v2232_v27, %v653_v56  ;;  %v771_v54 = vmul.f32 %v2282_v55, %v637_v58  ;;  %v868_v13 = vmul.f32 %v2194_v62, %v637_v58 }
 0x216   : >> { %1332 = vrot.lane.b32.xlu1 %v1307_v38, %s1906_s17  ;;  %v867_v12 = vmul.f32 %v2194_v62, %v653_v56 }
 0x217   : >> { %v810_v1 = vadd.f32 %v802_v59, %v770_v15  ;;  %v715_v16 = vpop.permute.xlu1 %714  ;;  %v811_v19 = vadd.f32 %v803_v28, %v771_v54  ;;  %1159 = vrot.lane.b32.xlu0 %v1132_v47, %s1906_s17  ;;  %v713_v9 = vpop.permute.xlu0 %712  ;;  %v657_v59 = vsel %vm635_vm7, %v626_v7, 0.0  ;;  %v1133_v7 = vmul.f32 %v2232_v27, %v637_v58 }
 0x218   : >> { %v725_v3 = vsel %vm635_vm7, %v713_v9, %v715_v16  ;;  %v741_v44 = vsel %vm635_vm7, 0.0, %v713_v9  ;;  %v745_v56 = vsel %vm635_vm7, %v715_v16, 0.0 }
 0x219   : >> { %v834_v43 = vmul.f32 %v2302_v22, %v741_v44  ;;  %v835_v55 = vmul.f32 %v2302_v22, %v725_v3  ;;  %v1045_v15 = vmul.f32 %v2216_v51, %v725_v3  ;;  %v869_v22 = vmul.f32 %v2194_v62, %v657_v59 }
 0x21a   : >> { %1330 = vrot.lane.b32.xlu1 %v1306_v6, %s1906_s17  ;;  %v1044_v58 = vmul.f32 %v2216_v51, %v741_v44 }
 0x21b   : >> { %v984_v2 = vpop.permute.xlu1 %983  ;;  %896 = vrot.lane.b32.xlu0 %v868_v13, %s1907_s18  ;;  %v1249_v32 = vpop.permute.xlu0 %1248  ;;  %v2543_v36 = vadd.f32 %v834_v43, %v810_v1  ;;  %v2545_v38 = vadd.f32 %v835_v55, %v811_v19  ;;  %v1046_v19 = vmul.f32 %v2216_v51, %v745_v56  ;;  %v1311_v13 = vmul.f32 %v2284_v41, %v745_v56 }
 0x21e   : >> { %894 = vrot.lane.b32.xlu1 %v867_v12, %s1907_s18  ;;  %v804_v12 = vmul.f32 %v2296_v61, %v2415_v18 }
 0x21f   : >> { %v988_v47 = vpop.permute.xlu1 %987  ;;  %1073 = vrot.lane.b32.xlu0 %v1045_v15, %s1907_s18  ;;  %v986_v28 = vpop.permute.xlu0 %985  ;;  %v1309_v15 = vmul.f32 %v2284_v41, %v741_v44 }
 0x220   : >> { %v2554_v54 = vsel %vm912_vm8, %v984_v2, %v986_v28  ;;  %v2557_v1 = vsel %vm912_vm8, %v986_v28, %v988_v47  ;;  %v1134_v28 = vmul.f32 %v2232_v27, %v657_v59 }
 0x222   : >> { %898 = vrot.lane.b32.xlu1 %v869_v22, %s1907_s18 }
 0x223   : >> { %v1251_v6 = vpop.permute.xlu1 %1250  ;;  %1161 = vrot.lane.b32.xlu0 %v1133_v7, %s1906_s17  ;;  %v1253_v9 = vpop.permute.xlu0 %1252  ;;  %v805_v7 = vmul.f32 %v2296_v61, %v2400_v40 }
 0x224   : >> { %v2563_v62 = vsel %vm1177_vm9, %v1249_v32, %v1251_v6  ;;  %v2567_v16 = vsel %vm1177_vm9, %v1251_v6, %v1253_v9  ;;  %v1310_v9 = vmul.f32 %v2284_v41, %v725_v3 }
 0x226   : >> { %1075 = vrot.lane.b32.xlu1 %v1046_v19, %s1907_s18 }
 0x227   : >> { %v628_v43 = vpop.permute.xlu1 %627  ;;  %1340 = vrot.lane.b32.xlu0 %v1311_v13, %s1906_s17  ;;  %v719_v2 = vpop.permute.xlu0 %718 }
 0x228   : >> { %v654_v55 = vsel %vm635_vm7, 0.0, %v628_v43 }
 0x229   : >> { %v772_v32 = vmul.f32 %v2294_v60, %v654_v55  ;;  %v870_v6 = vmul.f32 %v2206_v35, %v654_v55 }
 0x22a   : >> { %1071 = vrot.lane.b32.xlu1 %v1044_v58, %s1907_s18 }
 0x22b   : >> { %v812_v47 = vadd.f32 %v804_v12, %v772_v32  ;;  %v630_v22 = vpop.permute.xlu1 %629  ;;  %1336 = vrot.lane.b32.xlu0 %v1309_v15, %s1906_s17  ;;  %v992_v56 = vpop.permute.xlu0 %991  ;;  %v1135_v12 = vmul.f32 %v2272_v48, %v654_v55 }
 0x22c   : >> { %v638_v51 = vsel %vm635_vm7, %v628_v43, %v630_v22  ;;  %v746_v43 = vsel %vm635_vm7, %v719_v2, 0.0 }
 0x22d   : >> { %v773_v18 = vmul.f32 %v2294_v60, %v638_v51  ;;  %v871_v40 = vmul.f32 %v2206_v35, %v638_v51 }
 0x22e   : >> { %1163 = vrot.lane.b32.xlu1 %v1134_v28, %s1906_s17 }
 0x22f   : >> { %v813_v44 = vadd.f32 %v805_v7, %v773_v18  ;;  %v717_v19 = vpop.permute.xlu1 %716  ;;  %900 = vrot.lane.b32.xlu0 %v870_v6, %s1907_s18  ;;  %v1259_v13 = vpop.permute.xlu0 %1258 }
 0x230   : >> { %v726_v27 = vsel %vm635_vm7, %v717_v19, %v719_v2  ;;  %v2590_v59 = vsel %vm635_vm7, 0.0, %v717_v19  ;;  %v806_v2 = vmul.f32 %v2300_v14, %v2433_v63 }
 0x231   : >> { %v836_v61 = vmul.f32 %v2304_v50, %v2590_v59  ;;  %v837_v60 = vmul.f32 %v2304_v50, %v726_v27  ;;  %v658_v50 = vsel %vm635_vm7, %v630_v22, 0.0  ;;  %v1048_v63 = vmul.f32 %v2267_v46, %v726_v27 }
 0x232   : >> { %1338 = vrot.lane.b32.xlu1 %v1310_v9, %s1906_s17  ;;  %v872_v18 = vmul.f32 %v2206_v35, %v658_v50  ;;  %v1137_v22 = vmul.f32 %v2272_v48, %v658_v50 }
 0x233   : >> { %v990_v41 = vpop.permute.xlu1 %989  ;;  %v2599_v3 = vadd.f32 %v836_v61, %v812_v47  ;;  %v2601_v58 = vadd.f32 %v837_v60, %v813_v44  ;;  %902 = vrot.lane.b32.xlu0 %v871_v40, %s1907_s18  ;;  %v632_v15 = vpop.permute.xlu0 %631  ;;  %v1049_v47 = vmul.f32 %v2267_v46, %v746_v43  ;;  %v1314_v60 = vmul.f32 %v2274_v49, %v746_v43 }
 0x234   : >> { %v2605_v32 = vsel %vm912_vm8, %v990_v41, %v992_v56  ;;  %v655_v28 = vsel %vm635_vm7, 0.0, %v632_v15  ;;  %v1047_v40 = vmul.f32 %v2267_v46, %v2590_v59 }
 0x235   : >> { %v774_v7 = vmul.f32 %v2298_v0, %v655_v28  ;;  %v1138_v50 = vmul.f32 %v2255_v39, %v655_v28 }
 0x236   : >> { %1165 = vrot.lane.b32.xlu1 %v1135_v12, %s1906_s17 }
 0x237   : >> { %v1255_v55 = vpop.permute.xlu1 %1254  ;;  %v814_v6 = vadd.f32 %v806_v2, %v774_v7  ;;  %1081 = vrot.lane.b32.xlu0 %v1049_v47, %s1907_s18  ;;  %v723_v44 = vpop.permute.xlu0 %722  ;;  %v1136_v2 = vmul.f32 %v2272_v48, %v638_v51  ;;  %v807_v7 = vmul.f32 %v2300_v14, %v2450_v42 }
 0x23a   : >> { %904 = vrot.lane.b32.xlu1 %v872_v18, %s1907_s18 }
 0x23b   : >> { %v994_v19 = vpop.permute.xlu1 %993  ;;  %1169 = vrot.lane.b32.xlu0 %v1137_v22, %s1906_s17  ;;  %v996_v61 = vpop.permute.xlu0 %995  ;;  %v747_v22 = vsel %vm635_vm7, %v723_v44, 0.0 }
 0x23c   : >> { %v2621_v9 = vsel %vm912_vm8, %v992_v56, %v994_v19  ;;  %v1052_v42 = vmul.f32 %v2239_v30, %v747_v22 }
 0x23e   : >> { %1079 = vrot.lane.b32.xlu1 %v1048_v63, %s1907_s18 }
 0x23f   : >> { %v1257_v35 = vpop.permute.xlu1 %1256  ;;  %1346 = vrot.lane.b32.xlu0 %v1314_v60, %s1906_s17  ;;  %v1261_v56 = vpop.permute.xlu0 %1260 }
 0x240   : >> { %v2629_v41 = vsel %vm1177_vm9, %v1255_v55, %v1257_v35  ;;  %v2632_v12 = vsel %vm1177_vm9, %v1257_v35, %v1259_v13 }
 0x242   : >> { %1077 = vrot.lane.b32.xlu1 %v1047_v40, %s1907_s18 }
 0x243   : >> { %v634_v43 = vpop.permute.xlu1 %633  ;;  %1171 = vrot.lane.b32.xlu0 %v1138_v50, %s1906_s17  ;;  %v998_v46 = vpop.permute.xlu0 %997 }
 0x244   : >> { %v639_v47 = vsel %vm635_vm7, %v632_v15, %v634_v43  ;;  %v2645_v18 = vsel %vm912_vm8, %v996_v61, %v998_v46  ;;  %v1313_v15 = vmul.f32 %v2274_v49, %v726_v27  ;;  %v873_v27 = vmul.f32 %v2211_v45, %v655_v28 }
 0x245   : >> { %v775_v13 = vmul.f32 %v2298_v0, %v639_v47  ;;  %v874_v55 = vmul.f32 %v2211_v45, %v639_v47  ;;  %v659_v40 = vsel %vm635_vm7, %v634_v43, 0.0 }
 0x246   : >> { %1167 = vrot.lane.b32.xlu1 %v1136_v2, %s1906_s17 }
 0x247   : >> { %v815_v48 = vadd.f32 %v807_v7, %v775_v13  ;;  %v721_v51 = vpop.permute.xlu1 %720  ;;  %908 = vrot.lane.b32.xlu0 %v874_v55, %s1907_s18  ;;  %v1265_v50 = vpop.permute.xlu0 %1264  ;;  %v1317_v13 = vmul.f32 %v2288_v57, %v747_v22 }
 0x248   : >> { %v727_v19 = vsel %vm635_vm7, %v721_v51, %v723_v44  ;;  %v743_v63 = vsel %vm635_vm7, 0.0, %v721_v51 }
 0x249   : >> { %v838_v0 = vmul.f32 %v2306_v53, %v743_v63  ;;  %v839_v14 = vmul.f32 %v2306_v53, %v727_v19  ;;  %v1050_v53 = vmul.f32 %v2239_v30, %v743_v63  ;;  %v1051_v43 = vmul.f32 %v2239_v30, %v727_v19 }
 0x24a   : >> { %1344 = vrot.lane.b32.xlu1 %v1313_v15, %s1906_s17  ;;  %v1316_v55 = vmul.f32 %v2288_v57, %v727_v19  ;;  %v1312_v30 = vmul.f32 %v2274_v49, %v2590_v59 }
 0x24b   : >> { %v1000_v61 = vpop.permute.xlu1 %999  ;;  %v2657_v60 = vadd.f32 %v838_v0, %v814_v6  ;;  %v2659_v35 = vadd.f32 %v839_v14, %v815_v48  ;;  %1087 = vrot.lane.b32.xlu0 %v1052_v42, %s1907_s18  ;;  %v875_v6 = vmul.f32 %v2211_v45, %v659_v40  ;;  %v1139_v45 = vmul.f32 %v2255_v39, %v639_v47 }
 0x24c   : >> { %v2663_v44 = vsel %vm912_vm8, %v998_v46, %v1000_v61  ;;  %v1140_v46 = vmul.f32 %v2255_v39, %v659_v40 }
 0x24e   : >> { %906 = vrot.lane.b32.xlu1 %v873_v27, %s1907_s18 }
 0x24f   : >> { %v1263_v2 = vpop.permute.xlu1 %1262  ;;  %1083 = vrot.lane.b32.xlu0 %v1050_v53, %s1907_s18 }
 0x250   : >> { %v2671_v7 = vsel %vm1177_vm9, %v1261_v56, %v1263_v2  ;;  %v2674_v28 = vsel %vm1177_vm9, %v1263_v2, %v1265_v50  ;;  %v1315_v56 = vmul.f32 %v2288_v57, %v743_v63 }
 0x252   : >> { %910 = vrot.lane.b32.xlu1 %v875_v6, %s1907_s18 }
 0x253   : >> { %1175 = vrot.lane.b32.xlu0 %v1140_v46, %s1906_s17 }
 0x256   : >> { %1085 = vrot.lane.b32.xlu1 %v1051_v43, %s1907_s18 }
 0x257   : >> { %1352 = vrot.lane.b32.xlu0 %v1317_v13, %s1906_s17 }
 0x25a   : >> { %1173 = vrot.lane.b32.xlu1 %v1139_v45, %s1906_s17 }
 0x25b   : >> { %1348 = vrot.lane.b32.xlu0 %v1315_v56, %s1906_s17 }
 0x25e   : >> { %1350 = vrot.lane.b32.xlu1 %v1316_v55, %s1906_s17 }
 0x262   : >> { %1342 = vrot.lane.b32.xlu1 %v1312_v30, %s1906_s17  ;;  %s1827_s17 = scalar_lea.vmem (%p334_p11), %s1826_s16, 1024 }
 0x266   : >> { %1456 = vperm.xlu1 %1754, %v2053_v11  }
 0x274   : >> { %v1154_v39 = vpop.permute.xlu1 %1153  ;;  %v889_v47 = vpop.permute.xlu0 %888 }
 0x278   : >> { %v891_v22 = vpop.permute.xlu1 %890 }
 0x279   : >> { %v913_v48 = vsel %vm912_vm8, %v889_v47, %v891_v22  ;;  %v1068_v15 = vpop.permute.xlu0 %1067 }
 0x27a   : >> { %v929_v51 = vadd.f32 %v913_v48, %v2492_v5 }
 0x27c   : >> { %v893_v57 = vpop.permute.xlu1 %892  ;;  %v1017_v19 = vadd.f32 %v2504_v4, %v929_v51 }
 0x27d   : >> { %v914_v63 = vsel %vm912_vm8, %v891_v22, %v893_v57  ;;  %v1066_v49 = vpop.permute.xlu0 %1065 }
 0x27e   : >> { %v930_v0 = vadd.f32 %v914_v63, %v2494_v17  ;;  %v1089_v59 = vsel %vm912_vm8, %v1066_v49, %v1068_v15 }
 0x27f   : >> { %v1105_v27 = vadd.f32 %v1089_v59, %v1017_v19 }
 0x280   : >> { %v1070_v14 = vpop.permute.xlu1 %1069  ;;  %v1018_v42 = vadd.f32 %v2507_v29, %v930_v0 }
 0x281   : >> { %v1090_v61 = vsel %vm912_vm8, %v1068_v15, %v1070_v14  ;;  %v1156_v40 = vpop.permute.xlu0 %1155 }
 0x282   : >> { %v1178_v5 = vsel %vm1177_vm9, %v1154_v39, %v1156_v40  ;;  %v1106_v53 = vadd.f32 %v1090_v61, %v1018_v42 }
 0x283   : >> { %v1194_v50 = vadd.f32 %v1178_v5, %v1105_v27 }
 0x284   : >> { %v1158_v2 = vpop.permute.xlu1 %1157 }
 0x285   : >> { %v1179_v4 = vsel %vm1177_vm9, %v1156_v40, %v1158_v2  ;;  %v1335_v46 = vpop.permute.xlu0 %1334  ;;  %v1282_v17 = vadd.f32 %v2513_v52, %v1194_v50 }
 0x286   : >> { %v1195_v6 = vadd.f32 %v1179_v4, %v1106_v53 }
 0x288   : >> { %v1333_v43 = vpop.permute.xlu1 %1332  ;;  %v1283_v13 = vadd.f32 %v2517_v8, %v1195_v6 }
 0x289   : >> { %v1160_v45 = vpop.permute.xlu0 %1159  ;;  %v1355_v52 = vsel %vm1177_vm9, %v1333_v43, %v1335_v46 }
 0x28a   : >> { %v1371_v49 = vadd.f32 %v1355_v52, %v1283_v13 }
 0x28c   : >> { %v1331_v29 = vpop.permute.xlu1 %1330  ;;  %v2720_v61 = vadd.f32 %v2310_v33, %v1371_v49 }
 0x28d   : >> { %v897_v56 = vpop.permute.xlu0 %896  ;;  %v1354_v51 = vsel %vm1177_vm9, %v1331_v29, %v1333_v43 }
 0x28e   : >> { %v1370_v19 = vadd.f32 %v1354_v51, %v1282_v17  ;;  %v1407_v4 = vsub.f32 0.0, %v2720_v61 }
 0x290   : >> { %v895_v55 = vpop.permute.xlu1 %894 }
 0x291   : >> { %v915_v30 = vsel %vm912_vm8, %v895_v55, %v897_v56  ;;  %v1074_v47 = vpop.permute.xlu0 %1073 }
 0x292   : >> { %v931_v39 = vadd.f32 %v915_v30, %v2543_v36  ;;  %v2715_v36 = vadd.f32 %v2310_v33, %v1370_v19 }
 0x294   : >> { %v899_v22 = vpop.permute.xlu1 %898  ;;  %v1019_v48 = vadd.f32 %v2554_v54, %v931_v39  ;;  %v1406_v5 = vsub.f32 0.0, %v2715_v36 }
 0x295   : >> { %v916_v15 = vsel %vm912_vm8, %v897_v56, %v899_v22  ;;  %v1162_v57 = vpop.permute.xlu0 %1161  ;;  %v1416_v56 = vmul.f32 1.442695, %v1407_v4 }
 0x296   : >> { %v932_v8 = vadd.f32 %v916_v15, %v2545_v38  ;;  %v1180_v40 = vsel %vm1177_vm9, %v1160_v45, %v1162_v57  ;;  %v1414_v43 = vmul.f32 1.442695, %v1406_v5 }
 0x298   : >> { %v1076_v63 = vpop.permute.xlu1 %1075  ;;  %v1020_v0 = vadd.f32 %v2557_v1, %v932_v8  ;;  %1787 = vpow2.f32 %v1414_v43 }
 0x299   : >> { %v1341_v59 = vpop.permute.xlu0 %1340  ;;  %v1092_v54 = vsel %vm912_vm8, %v1074_v47, %v1076_v63  ;;  %1789 = vpow2.f32 %v1416_v56 }
 0x29a   : >> { %v1108_v1 = vadd.f32 %v1092_v54, %v1020_v0 }
 0x29c   : >> { %v1072_v14 = vpop.permute.xlu1 %1071 }
 0x29d   : >> { %v1091_v42 = vsel %vm912_vm8, %v1072_v14, %v1074_v47  ;;  %v1337_v38 = vpop.permute.xlu0 %1336 }
 0x29e   : >> { %v1107_v27 = vadd.f32 %v1091_v42, %v1019_v48 }
 0x2a0   : >> { %v1196_v53 = vadd.f32 %v1180_v40, %v1107_v27  ;;  %v1164_v50 = vpop.permute.xlu1 %1163 }
 0x2a1   : >> { %v1181_v2 = vsel %vm1177_vm9, %v1162_v57, %v1164_v50  ;;  %v901_v46 = vpop.permute.xlu0 %900 }
 0x2a2   : >> { %v1197_v6 = vadd.f32 %v1181_v2, %v1108_v1  ;;  %v1284_v17 = vadd.f32 %v2563_v62, %v1196_v53  ;;  %v1788_v14 = vpop.eup %1787 }
 0x2a3   : >> { %v1790_v42 = vpop.eup %1789 }
 0x2a4   : >> { %v1339_v33 = vpop.permute.xlu1 %1338  ;;  %v1285_v13 = vadd.f32 %v2567_v16, %v1197_v6  ;;  %v1431_v1 = vadd.f32 1.0, %v1790_v42 }
 0x2a5   : >> { %v1356_v29 = vsel %vm1177_vm9, %v1337_v38, %v1339_v33  ;;  %v1357_v45 = vsel %vm1177_vm9, %v1339_v33, %v1341_v59  ;;  %v903_v39 = vpop.permute.xlu0 %902 }
 0x2a6   : >> { %v1372_v55 = vadd.f32 %v1356_v29, %v1284_v17  ;;  %v1373_v30 = vadd.f32 %v1357_v45, %v1285_v13  ;;  %v917_v47 = vsel %vm912_vm8, %v901_v46, %v903_v39 }
 0x2a7   : >> { %v933_v62 = vadd.f32 %v917_v47, %v2599_v3 }
 0x2a8   : >> { %v2732_v22 = vadd.f32 %v2308_v31, %v1372_v55  ;;  %v1166_v48 = vpop.permute.xlu1 %1165  ;;  %v2736_v51 = vadd.f32 %v2308_v31, %v1373_v30 }
 0x2a9   : >> { %v1082_v15 = vpop.permute.xlu0 %1081  ;;  %v1021_v52 = vadd.f32 %v2605_v32, %v933_v62  ;;  %v1430_v32 = vadd.f32 1.0, %v1788_v14 }
 0x2aa   : >> { %v1408_v16 = vsub.f32 0.0, %v2732_v22  ;;  %v1409_v8 = vsub.f32 0.0, %v2736_v51 }
 0x2ac   : >> { %v1418_v57 = vmul.f32 1.442695, %v1408_v16  ;;  %v905_v19 = vpop.permute.xlu1 %904  ;;  %v1420_v63 = vmul.f32 1.442695, %v1409_v8 }
 0x2ad   : >> { %v918_v0 = vsel %vm912_vm8, %v903_v39, %v905_v19  ;;  %v1170_v49 = vpop.permute.xlu0 %1169 }
 0x2ae   : >> { %1791 = vpow2.f32 %v1418_v57  ;;  %v934_v3 = vadd.f32 %v918_v0, %v2601_v58 }
 0x2af   : >> { %1793 = vpow2.f32 %v1420_v63 }
 0x2b0   : >> { %v1080_v31 = vpop.permute.xlu1 %1079  ;;  %v1022_v59 = vadd.f32 %v2621_v9, %v934_v3  ;;  %1795 = vrcp.f32 %v1430_v32 }
 0x2b1   : >> { %v1347_v54 = vpop.permute.xlu0 %1346  ;;  %v1094_v38 = vsel %vm912_vm8, %v1080_v31, %v1082_v15  ;;  %1797 = vrcp.f32 %v1431_v1 }
 0x2b2   : >> { %v1110_v50 = vadd.f32 %v1094_v38, %v1022_v59 }
 0x2b4   : >> { %v1078_v27 = vpop.permute.xlu1 %1077 }
 0x2b5   : >> { %v1093_v40 = vsel %vm912_vm8, %v1078_v27, %v1080_v31  ;;  %v1172_v5 = vpop.permute.xlu0 %1171 }
 0x2b6   : >> { %v1109_v2 = vadd.f32 %v1093_v40, %v1021_v52 }
 0x2b8   : >> { %v1792_v53 = vpop.eup %1791  ;;  %v1168_v58 = vpop.permute.xlu1 %1167 }
 0x2b9   : >> { %v1794_v4 = vpop.eup %1793  ;;  %v1432_v6 = vadd.f32 1.0, %v1792_v53  ;;  %v1182_v9 = vsel %vm1177_vm9, %v1166_v48, %v1168_v58  ;;  %v1183_v46 = vsel %vm1177_vm9, %v1168_v58, %v1170_v49  ;;  %v909_v33 = vpop.permute.xlu0 %908 }
 0x2ba   : >> { %v1198_v17 = vadd.f32 %v1182_v9, %v1109_v2  ;;  %v1199_v43 = vadd.f32 %v1183_v46, %v1110_v50  ;;  %v1433_v13 = vadd.f32 1.0, %v1794_v4  ;;  %v1796_v16 = vpop.eup %1795 }
 0x2bb   : >> { %1799 = vrcp.f32 %v1432_v6  ;;  %v1798_v15 = vpop.eup %1797  ;;  %v1446_v3 = vmul.f32 %v1796_v16, %v2715_v36 }
 0x2bc   : >> { %v1345_v29 = vpop.permute.xlu1 %1344  ;;  %v1287_v45 = vadd.f32 %v2632_v12, %v1199_v43  ;;  %1801 = vrcp.f32 %v1433_v13  ;;  %v1286_v56 = vadd.f32 %v2629_v41, %v1198_v17 }
 0x2bd   : >> { %v1088_v55 = vpop.permute.xlu0 %1087  ;;  %v1359_v47 = vsel %vm1177_vm9, %v1345_v29, %v1347_v54 }
 0x2be   : >> { %v1375_v19 = vadd.f32 %v1359_v47, %v1287_v45 }
 0x2c0   : >> { %v907_v30 = vpop.permute.xlu1 %906  ;;  %v1403_v54 = vadd.f32 %v2312_v34, %v1375_v19 }
 0x2c1   : >> { %v919_v39 = vsel %vm912_vm8, %v907_v30, %v909_v33  ;;  %v1084_v48 = vpop.permute.xlu0 %1083 }
 0x2c2   : >> { %v935_v62 = vadd.f32 %v919_v39, %v2657_v60  ;;  %v1447_v60 = vmul.f32 %v1798_v15, %v2720_v61  ;;  %v1411_v61 = vsub.f32 0.0, %v1403_v54 }
 0x2c4   : >> { %v911_v52 = vpop.permute.xlu1 %910  ;;  %v1023_v8 = vadd.f32 %v2645_v18, %v935_v62  ;;  %v1424_v4 = vmul.f32 1.442695, %v1411_v61 }
 0x2c5   : >> { %v1800_v57 = vpop.eup %1799  ;;  %v920_v12 = vsel %vm912_vm8, %v909_v33, %v911_v52  ;;  %v1176_v0 = vpop.permute.xlu0 %1175 }
 0x2c6   : >> { %v1802_v63 = vpop.eup %1801  ;;  %v936_v41 = vadd.f32 %v920_v12, %v2659_v35  ;;  %v1448_v49 = vmul.f32 %v1800_v57, %v2732_v22  ;;  %1803 = vpow2.f32 %v1424_v4 }
 0x2c7   : >> { %v1449_v31 = vmul.f32 %v1802_v63, %v2736_v51 }
 0x2c8   : >> { %v1086_v59 = vpop.permute.xlu1 %1085  ;;  %v1024_v14 = vadd.f32 %v2663_v44, %v936_v41  ;;  %v1655_v18 = vpack.c.bf16 %v1448_v49, %v1446_v3 }
 0x2c9   : >> { %v1095_v42 = vsel %vm912_vm8, %v1084_v48, %v1086_v59  ;;  %v1096_v27 = vsel %vm912_vm8, %v1086_v59, %v1088_v55  ;;  %v1653_v35 = vpack.c.bf16 %v1449_v31, %v1447_v60  ;;  %v1353_v32 = vpop.permute.xlu0 %1352 }
 0x2ca   : >> { %v1111_v36 = vadd.f32 %v1095_v42, %v1023_v8  ;;  %v1112_v38 = vadd.f32 %v1096_v27, %v1024_v14  ;;  %v1819_v42 = vld [vmem:[%s2129_s8] sm:$0xff] }
 0x2cb   : >> { %1654 = vmatprep.subr.bf16.mxu1 %v1653_v35  ;;  %v1820_v35 = vld [vmem:[%s2129_s8 + $0x8] sm:$0xff]  ;;  %s1555_s8 = sshll.u32 (%p334_p11), %s274_s14, 4  ;;  %s2792_s8 = int_to_ptr.vmem [resolvable:$true] %s1555_s8 }
 0x2cc   : >> { %1656 = vmatpush1.bf16.msra.mxu1 %v1655_v18  ;;  %v1174_v22 = vpop.permute.xlu1 %1173  ;;  %s1821_s22 = scalar_lea.vmem (%p334_p11), %s2792_s8, 512  ;;  %p1828_p1 = scmp.lt.s32.totalorder (%p334_p11), %s2792_s8, %s1826_s16 }
 0x2cd   : >> { %v1184_v51 = vsel %vm1177_vm9, %v1172_v5, %v1174_v22  ;;  %v1185_v40 = vsel %vm1177_vm9, %v1174_v22, %v1176_v0  ;;  %v1349_v53 = vpop.permute.xlu0 %1348  ;;  %p1822_p12 = scmp.ne.s32.totalorder (%p334_p11), %s2792_s8, %s1821_s22  ;;  %p1829_p2 = scmp.lt.s32.totalorder (%p334_p11), %s1827_s17, %s1821_s22 }
 0x2ce   : >> { %v1200_v44 = vadd.f32 %v1184_v51, %v1111_v36  ;;  %v1201_v1 = vadd.f32 %v1185_v40, %v1112_v38 }
 0x2cf   : > { %p1823_p13 = pnand (%p334_p11), %p1822_p12, %p1989_p5  ;;  %p1830_p3 = por (%p334_p11), %p1829_p2, %p1828_p1 }
 0x2d0   : >> { %v1351_v50 = vpop.permute.xlu1 %1350  ;;  %v1288_v2 = vadd.f32 %v2671_v7, %v1200_v44  ;;  %v1289_v58 = vadd.f32 %v2674_v28, %v1201_v1  ;;  %v1804_v48 = vpop.eup %1803 }
 0x2d1   : >> { %v1360_v6 = vsel %vm1177_vm9, %v1349_v53, %v1351_v50  ;;  %v1361_v9 = vsel %vm1177_vm9, %v1351_v50, %v1353_v32  ;;  %v1435_v16 = vadd.f32 1.0, %v1804_v48  ;;  %p1824_p0 = pneg (%p334_p11), %p1823_p13 }
 0x2d2   : >> { %v1376_v46 = vadd.f32 %v1360_v6, %v1288_v2  ;;  %v1377_v17 = vadd.f32 %v1361_v9, %v1289_v58 }
 0x2d3   : > { %p1831_p4 = pnand (%p334_p11), %p1830_p3, %p1824_p0 }
 0x2d4   : >> { %v1404_v43 = vadd.f32 %v2314_v37, %v1376_v46  ;;  %v1405_v5 = vadd.f32 %v2314_v37, %v1377_v17  ;;  %v1343_v33 = vpop.permute.xlu1 %1342 }
 0x2d5   : >> { %v1358_v13 = vsel %vm1177_vm9, %v1343_v33, %v1345_v29 }
 0x2d6   : >> { %v1412_v45 = vsub.f32 0.0, %v1404_v43  ;;  %v1413_v55 = vsub.f32 0.0, %v1405_v5  ;;  %v1374_v7 = vadd.f32 %v1358_v13, %v1286_v56 }
 0x2d8   : >> { %v1426_v30 = vmul.f32 1.442695, %v1412_v45  ;;  %v1428_v28 = vmul.f32 1.442695, %v1413_v55  ;;  %v1402_v39 = vadd.f32 %v2312_v34, %v1374_v7 }
 0x2da   : >> { %1805 = vpow2.f32 %v1426_v30  ;;  %v1410_v47 = vsub.f32 0.0, %v1402_v39 }
 0x2db   : >> { %1807 = vpow2.f32 %v1428_v28 }
 0x2dc   : >> { %v1422_v62 = vmul.f32 1.442695, %v1410_v47 }
 0x2de   : >> { %1809 = vpow2.f32 %v1422_v62 }
 0x2df   : >> { %1811 = vrcp.f32 %v1435_v16 }
 0x2e4   : >> { %v1806_v15 = vpop.eup %1805 }
 0x2e5   : >> { %v1808_v37 = vpop.eup %1807  ;;  %v1436_v52 = vadd.f32 1.0, %v1806_v15  ;;  %v1457_v31 = vpop.permute.xlu1 %1456 }
 0x2e6   : >> { %v1437_v8 = vadd.f32 1.0, %v1808_v37 }
 0x2e8   : >> { %v1810_v29 = vpop.eup %1809  ;;  %1813 = vrcp.f32 %v1437_v8 }
 0x2e9   : >> { %1815 = vrcp.f32 %v1436_v52  ;;  %v1434_v56 = vadd.f32 1.0, %v1810_v29  ;;  %v1812_v57 = vpop.eup %1811 }
 0x2ea   : >> { %v1451_v12 = vmul.f32 %v1812_v57, %v1403_v54 }
 0x2eb   : >> { %1817 = vrcp.f32 %v1434_v56 }
 0x2f2   : >> { %v1814_v19 = vpop.eup %1813 }
 0x2f3   : >> { %v1816_v34 = vpop.eup %1815  ;;  %v1453_v63 = vmul.f32 %v1814_v19, %v1405_v5 }
 0x2f4   : >> { %v1452_v49 = vmul.f32 %v1816_v34, %v1404_v43 }
 0x2f5   : >> { %v1818_v41 = vpop.eup %1817  ;;  %v1657_v0 = vpack.c.bf16 %v1453_v63, %v1451_v12 }
 0x2f6   : >> { %v1450_v3 = vmul.f32 %v1818_v41, %v1402_v39 }
 0x2f7   : >> { %1658 = vmatprep.subr.bf16.mxu1 %v1657_v0 }
 0x2f8   : >> { %v1659_v60 = vpack.c.bf16 %v1452_v49, %v1450_v3 }
 0x2fa   : >> { %1660 = vmatpush1.bf16.msra.mxu1 %v1659_v60 }
 0x2fd   : >> { %1640 = vmatmul.mubr.msk.f32.vlgmr.msra.gmra.mrb[0].mxu1 %vm1459_vm10, %v2048_v10 }
 0x3d0   : >> { %v1529_v59 = vpop.f32.mrb[0].mxu1  ;;  %336 = sbr.rel (!%p334_p11) target bundleno = 30 (0x1e), region = 92 }
 0x3d1   : >> { %v1530_v14 = vadd.f32 %v1529_v59, %v1457_v31  ;;  %v1531_v18 = vpop.f32.mrb[1].mxu1 }
 0x3d2   : >> { %v1532_v54 = vadd.f32 %v1531_v18, %v1457_v31 }
 0x3d3   : >> { %v1534_v27 = vadd.f32 %v1819_v42, %v1530_v14 }
 0x3d4   : >> { %v1535_v32 = vadd.f32 %v1820_v35, %v1532_v54 }
 0x3d5   : >> { %1538 = vst [vmem:[%s1537_s19] sm:$0xff] %v1534_v27 }
 0x3d6   : >> { %1539 = vst [vmem:[%s1537_s19 + $0x8] sm:$0xff] %v1535_v32 }
 0x3d7   : > { %1834 = shalt.err (!%p1831_p4)
}
 0x3d8   : > { %s1835_s13 = scalar_lea.hbm %s2788_s15, 512  ;;  %s1839_s18 = scalar_lea.hbm %s2844_s7, 1024 }
 0x3d9   : > { %p1836_p7 = scmp.ne.s32.totalorder %s2788_s15, %s1835_s13  ;;  %p1840_p10 = scmp.lt.u32.totalorder %s2788_s15, %s2844_s7 }
 0x3da   : > { %p1841_p11 = scmp.lt.u32.totalorder %s1839_s18, %s1835_s13  ;;  %p1843_p13 = scmp.lt.u32.totalorder %s1835_s13, %s2788_s15 }
 0x3db   : > { %p1837_p8 = pnand %p1836_p7, %p1989_p5 }
 0x3dc   : > { %p1842_p12 = por %p1841_p11, %p1840_p10 }
 0x3dd   : > { %p1838_p9 = pneg %p1837_p8 }
 0x3de   : > { %p1844_p0 = por %p1843_p13, %p1842_p12 }
 0x3e0   : > { %p1845_p1 = pnand %p1844_p0, %p1838_p9 }
 0x3e2   : > { %1848 = shalt.err (!%p1845_p1)
}
 0x3e3   : > { %s1909_s9 = smov 256   ;;  %s1910_s29 = smov 16  }
 0x3e4   : > { %1661 = dma.vmem_to_hbm [thread:$0]  (%p1989_p5), %s2792_s8, 512, %s2788_s15, %s2796_s23, %s1909_s9, %s1909_s9, %s1910_s29  }
 0x3e5 PF: > { %p1667_p2 = scmp.ge.s32.totalorder %s1887_s27, 2  ;;  %s1570_s22 = sand.u32 1, %s1875_s24  }
 0x3e6   : > { %s1571_s28 = scalar_lea.sflag [#allocation3], %s1570_s22 }
 0x3e7   : > { %p1664_p3 = pnand %p1667_p2, %p1993_p6 }
 0x3e9   : > { %1870 = dma.done.wait (!%p1664_p3), %s1571_s28, 512  }
 0x3ea   : > { %1872 = vsyncadd (!%p1664_p3), %s1571_s28, 4294966784  ;;  %p17_p4 = scmp.ge.s32.totalorder %s1976_s30, 4   ;;  %s2887_s24 = smov %s1879_s25 }
 0x3eb   : > { %s2888_s25 = smov %s1883_s26  ;;  %s2889_s26 = smov %s1987_s10 }
 0x3ec   : > { %s2890_s27 = smov %s1976_s30  ;;  %19 = sbr.rel (!%p17_p4) target bundleno = 3 (0x3), region = 103 }
 0x3f3   :  { %1576 = vsyncpa [#allocation3], 1 }
 0x3f4   :  { %1578 = vsyncpa [#allocation3 + $0x1], 1 }

</bundles_post_ra>
